<compile_context>
chip_gen: v6e
topology: v6e:2x2x1
jax: 0.10.0
libtpu: 0.0.40
codegen_flags: <defaults>
</compile_context>

<pallas_src>
import jax
import jax.numpy as jnp
from jax.experimental import pallas as pl
from jax.experimental.pallas import tpu as pltpu


# ---------------------------------------------------------------------------
# Fused kernel factory: all LSTM layers + FC head, whole problem resident in VMEM.
# ---------------------------------------------------------------------------
def _make_fused_lstm_kernel(num_layers, T, Bp, H, Fout, compute_dtype):
    G = 4 * H

    def kernel(x_ref, wih0_ref, w_all_ref, b_all_ref, fc_wb_ref, out_ref):
        # Lane mask for the cell-candidate ("g") gate lanes [2H, 3H) of the 4H tile.
        lane = jax.lax.broadcasted_iota(jnp.int32, (Bp, G), 1)
        g_mask = (lane >= 2 * H) & (lane < 3 * H)

        def run_layer(gall, whh):
            # gall: (T*Bp, 4H) f32 pre-activations (hoisted input proj + bias),
            #       time-major so each per-step slice is an aligned 8-row block.
            # whh : (H, 4H) in compute dtype.
            h = jnp.zeros((Bp, H), jnp.float32)
            c = jnp.zeros((Bp, H), jnp.float32)
            hs = []
            for t in range(T):                                   # trace-unrolled (T small)
                g = gall[t * Bp:(t + 1) * Bp, :] + jnp.dot(
                    h.astype(compute_dtype), whh,
                    preferred_element_type=jnp.float32)          # (Bp, 4H)
                # One EUP pass over the whole gate tile:
                #   sigmoid on i|f|o lanes; tanh(x) = 2*sigmoid(2x) - 1 on g lanes.
                gp = jnp.where(g_mask, g + g, g)
                s = jax.nn.sigmoid(gp)
                a = jnp.where(g_mask, s + s - 1.0, s)
                c = a[:, H:2 * H] * c + a[:, 0:H] * a[:, 2 * H:3 * H]
                h = a[:, 3 * H:4 * H] * jnp.tanh(c)
                hs.append(h)
            return hs

        # ---- layer 0: input projection hoisted, but done inside the kernel ----
        gall0 = jnp.dot(x_ref[...], wih0_ref[...],
                        preferred_element_type=jnp.float32) + b_all_ref[0]
        hs = run_layer(gall0, w_all_ref[0])

        # ---- layers 1..L-1: one hoisted (T*Bp, H) x (H, 4H) projection per layer ----
        for l in range(1, num_layers):
            hseq = jnp.concatenate(hs, axis=0).astype(compute_dtype)    # (T*Bp, H)
            gall = jnp.dot(hseq, w_all_ref[2 * l - 1],
                           preferred_element_type=jnp.float32) + b_all_ref[l]
            hs = run_layer(gall, w_all_ref[2 * l])

        # ---- FC head: single (Bp, T*H) x (T*H, Fout) matmul ----
        hcat = jnp.concatenate(hs, axis=1).astype(compute_dtype)        # (Bp, T*H)
        fcw = fc_wb_ref[0:T * H, :].astype(compute_dtype)               # (T*H, Fout)
        fcb = fc_wb_ref[T * H:T * H + 1, :]                             # (1, Fout) f32
        out_ref[...] = (jnp.dot(hcat, fcw, preferred_element_type=jnp.float32)
                        + fcb).astype(out_ref.dtype)

    return kernel


# ---------------------------------------------------------------------------
# Forward pass (mirrors LSTM.forward)
# ---------------------------------------------------------------------------
def lstm_model_forward(params, x, output_size, *, compute_dtype=jnp.float32):
    # x: (B, T, D) batch_first, like PyTorch.
    B, T, D = x.shape
    lstm_params = params["lstm"]
    num_layers = len(lstm_params)
    H = lstm_params[0][1].shape[0]
    Fout = params["fc_b"].shape[-1]
    Bp = 8  # pad batch rows to the sublane granularity; padded rows are discarded.

    # Tiny wrapper-side layout prep: time-major + batch pad (cheap; the heavy layer-0
    # matmul itself now runs inside the kernel).
    x_tm = jnp.swapaxes(x, 0, 1)                                  # (T, B, D)
    x_tm = jnp.pad(x_tm, ((0, 0), (0, Bp - B), (0, 0)))           # (T, Bp, D)
    x_pad = x_tm.reshape(T * Bp, D).astype(compute_dtype)

    # Packed parameter arrays (fewer DMA descriptors).
    w_ih0 = lstm_params[0][0].astype(compute_dtype)               # (D, 4H)
    w_all = jnp.stack(
        [lstm_params[0][1]] +
        [w for (wih, whh, _) in lstm_params[1:] for w in (wih, whh)],
        axis=0).astype(compute_dtype)                             # (2L-1, H, 4H)
    b_all = jnp.stack([b for (_, _, b) in lstm_params], axis=0)   # (L, 1, 4H) f32
    fc_wb = jnp.concatenate([params["fc_w_t"], params["fc_b"]],
                            axis=0)                               # (T*H + 1, Fout) f32

    kernel = _make_fused_lstm_kernel(num_layers, T, Bp, H, Fout, compute_dtype)
    out = pl.pallas_call(
        kernel,
        out_shape=jax.ShapeDtypeStruct((Bp, Fout), jnp.float32),
        in_specs=[pl.BlockSpec(memory_space=pltpu.MemorySpace.VMEM)] * 5,
        out_specs=pl.BlockSpec(memory_space=pltpu.MemorySpace.VMEM),
    )(x_pad, w_ih0, w_all, b_all, fc_wb)
    return out[:B].reshape(B, T, output_size)


# ---------------------------------------------------------------------------
# Parameter init (deterministic, PyTorch-style U(-1/sqrt(H), 1/sqrt(H))).
# ---------------------------------------------------------------------------
def init_params(key, input_size, hidden_size, output_size, seq_len, num_layers):
    k = 1.0 / jnp.sqrt(jnp.float32(hidden_size))
    params = {"lstm": []}
    keys = jax.random.split(key, num_layers * 4 + 2)
    for layer in range(num_layers):
        d_in = input_size if layer == 0 else hidden_size
        k0, k1, k2, k3 = keys[4 * layer:4 * layer + 4]
        w_ih = jax.random.uniform(k0, (4 * hidden_size, d_in), jnp.float32, -k, k)
        w_hh = jax.random.uniform(k1, (4 * hidden_size, hidden_size), jnp.float32, -k, k)
        b_ih = jax.random.uniform(k2, (4 * hidden_size,), jnp.float32, -k, k)
        b_hh = jax.random.uniform(k3, (4 * hidden_size,), jnp.float32, -k, k)
        params["lstm"].append(
            (w_ih.T, w_hh.T, (b_ih + b_hh).reshape(1, 4 * hidden_size)))
    fin = hidden_size * seq_len
    fout = output_size * seq_len
    kf = 1.0 / jnp.sqrt(jnp.float32(fin))
    fc_w = jax.random.uniform(keys[-2], (fout, fin), jnp.float32, -kf, kf)
    fc_b = jax.random.uniform(keys[-1], (fout,), jnp.float32, -kf, kf)
    params["fc_w_t"] = fc_w.T                 # (T*H, Fout)
    params["fc_b"] = fc_b.reshape(1, fout)
    return params


# ---------------------------------------------------------------------------
# Pure-JAX reference for correctness check
# ---------------------------------------------------------------------------
def ref_forward(params, x, output_size):
    B, T, _ = x.shape
    h_seq = x
    for (w_ih_t, w_hh_t, b) in params["lstm"]:
        H = w_hh_t.shape[0]
        h = jnp.zeros((B, H), jnp.float32)
        c = jnp.zeros((B, H), jnp.float32)
        outs = []
        for t in range(T):
            gates = h_seq[:, t] @ w_ih_t + h @ w_hh_t + b
            i_g = jax.nn.sigmoid(gates[:, :H])
            f_g = jax.nn.sigmoid(gates[:, H:2 * H])
            g_g = jnp.tanh(gates[:, 2 * H:3 * H])
            o_g = jax.nn.sigmoid(gates[:, 3 * H:])
            c = f_g * c + i_g * g_g
            h = o_g * jnp.tanh(c)
            outs.append(h)
        h_seq = jnp.stack(outs, axis=1)
    flat = h_seq.reshape(B, -1)
    out = flat @ params["fc_w_t"] + params["fc_b"]
    return out.reshape(B, -1, output_size)


if __name__ == "__main__":
    input_size, hidden_size, output_size = 16, 32, 8
    sequence_length, num_layers, batch = 8, 2, 2

    key = jax.random.PRNGKey(0)
    pkey, xkey = jax.random.split(key)
    params = init_params(pkey, input_size, hidden_size, output_size,
                         sequence_length, num_layers)
    x = jax.random.normal(xkey, (batch, sequence_length, input_size), jnp.float32)

    ref = ref_forward(params, x, output_size)

    # f32 path (exact up to accumulation order).
    out = lstm_model_forward(params, x, output_size)
    out = jax.block_until_ready(out)
    assert out.shape == (batch, sequence_length, output_size), out.shape
    assert jnp.allclose(out, ref, atol=1e-4, rtol=1e-4), "f32 mismatch vs reference"

    # bf16 MXU-operand path (v6e/v7x): f32 accumulation + f32 cell/hidden state,
    # so only operand-rounding error remains -> loose tolerance smoke check.
    out_bf16 = lstm_model_forward(params, x, output_size,
                                  compute_dtype=jnp.bfloat16)
    out_bf16 = jax.block_until_ready(out_bf16)
    assert jnp.allclose(out_bf16, ref, atol=1e-1, rtol=1e-1), "bf16 mismatch vs reference"

    print("KERNEL_OK")
</pallas_src>

<mosaic_0001>
module attributes {stable_mosaic.version = 11 : i64} {
  func.func @kernel(%arg0: memref<64x16xf32, #tpu.memory_space<vmem>>, %arg1: memref<16x128xf32, #tpu.memory_space<vmem>>, %arg2: memref<3x32x128xf32, #tpu.memory_space<vmem>>, %arg3: memref<2x1x128xf32, #tpu.memory_space<vmem>>, %arg4: memref<257x64xf32, #tpu.memory_space<vmem>>, %arg5: memref<8x64xf32, #tpu.memory_space<vmem>>) attributes {dimension_semantics = [], scalar_prefetch = 0 : i64, scratch_operands = 0 : i64, tpu.core_type = #tpu.core_type<tc>} {
    %0 = tpu.iota {dimensions = array<i32: 1>} : vector<8x128xi32>
    %c64_i32 = arith.constant 64 : i32
    %1 = vector.broadcast %c64_i32 : i32 to vector<8x128xi32>
    %2 = arith.cmpi sge, %0, %1 : vector<8x128xi32>
    %c96_i32 = arith.constant 96 : i32
    %3 = vector.broadcast %c96_i32 : i32 to vector<8x128xi32>
    %4 = arith.cmpi slt, %0, %3 : vector<8x128xi32>
    %5 = arith.andi %2, %4 : vector<8x128xi1>
    %c0 = arith.constant 0 : index
    %c0_0 = arith.constant 0 : index
    %6 = vector.load %arg0[%c0, %c0_0] : memref<64x16xf32, #tpu.memory_space<vmem>>, vector<64x16xf32>
    %c0_1 = arith.constant 0 : index
    %c0_2 = arith.constant 0 : index
    %7 = vector.load %arg1[%c0_1, %c0_2] : memref<16x128xf32, #tpu.memory_space<vmem>>, vector<16x128xf32>
    %cst = arith.constant dense<0.000000e+00> : vector<64x128xf32>
    %8 = tpu.matmul %6, %7, %cst {dimension_numbers = #tpu.dot_dimension_numbers<[1], [0], [0], [1], [0, 0, 1, 1], [], []>} : vector<64x16xf32>, vector<16x128xf32>, vector<64x128xf32> -> vector<64x128xf32>
    %c0_3 = arith.constant 0 : index
    %c0_4 = arith.constant 0 : index
    %c0_5 = arith.constant 0 : index
    %9 = vector.load %arg3[%c0_3, %c0_4, %c0_5] : memref<2x1x128xf32, #tpu.memory_space<vmem>>, vector<1x1x128xf32>
    %10 = vector.shape_cast %9 : vector<1x1x128xf32> to vector<1x128xf32>
    %11 = vector.broadcast %10 : vector<1x128xf32> to vector<64x128xf32>
    %12 = arith.addf %8, %11 : vector<64x128xf32>
    %c0_6 = arith.constant 0 : index
    %c0_7 = arith.constant 0 : index
    %c0_8 = arith.constant 0 : index
    %13 = vector.load %arg2[%c0_6, %c0_7, %c0_8] : memref<3x32x128xf32, #tpu.memory_space<vmem>>, vector<1x32x128xf32>
    %14 = vector.shape_cast %13 : vector<1x32x128xf32> to vector<32x128xf32>
    %cst_9 = arith.constant 0.000000e+00 : f32
    %15 = vector.broadcast %cst_9 : f32 to vector<8x32xf32>
    %cst_10 = arith.constant 0.000000e+00 : f32
    %16 = vector.broadcast %cst_10 : f32 to vector<8x32xf32>
    %17 = vector.extract_strided_slice %12 {offsets = [0, 0], sizes = [8, 128], strides = [1, 1]} : vector<64x128xf32> to vector<8x128xf32>
    %cst_11 = arith.constant dense<0.000000e+00> : vector<8x128xf32>
    %18 = tpu.matmul %15, %14, %cst_11 {dimension_numbers = #tpu.dot_dimension_numbers<[1], [0], [0], [1], [0, 0, 1, 1], [], []>} : vector<8x32xf32>, vector<32x128xf32>, vector<8x128xf32> -> vector<8x128xf32>
    %19 = arith.addf %17, %18 : vector<8x128xf32>
    %20 = arith.addf %19, %19 : vector<8x128xf32>
    %21 = arith.select %5, %20, %19 : vector<8x128xi1>, vector<8x128xf32>
    %22 = arith.negf %21 : vector<8x128xf32>
    %23 = math.exp %22 : vector<8x128xf32>
    %cst_12 = arith.constant 1.000000e+00 : f32
    %24 = vector.broadcast %cst_12 : f32 to vector<8x128xf32>
    %25 = arith.addf %24, %23 : vector<8x128xf32>
    %26 = arith.divf %24, %25 : vector<8x128xf32>
    %27 = arith.addf %26, %26 : vector<8x128xf32>
    %cst_13 = arith.constant 1.000000e+00 : f32
    %28 = vector.broadcast %cst_13 : f32 to vector<8x128xf32>
    %29 = arith.subf %27, %28 : vector<8x128xf32>
    %30 = arith.select %5, %29, %26 : vector<8x128xi1>, vector<8x128xf32>
    %31 = vector.extract_strided_slice %30 {offsets = [0, 32], sizes = [8, 32], strides = [1, 1]} : vector<8x128xf32> to vector<8x32xf32>
    %32 = arith.mulf %31, %16 : vector<8x32xf32>
    %33 = vector.extract_strided_slice %30 {offsets = [0, 0], sizes = [8, 32], strides = [1, 1]} : vector<8x128xf32> to vector<8x32xf32>
    %34 = vector.extract_strided_slice %30 {offsets = [0, 64], sizes = [8, 32], strides = [1, 1]} : vector<8x128xf32> to vector<8x32xf32>
    %35 = arith.mulf %33, %34 : vector<8x32xf32>
    %36 = arith.addf %32, %35 : vector<8x32xf32>
    %37 = vector.extract_strided_slice %30 {offsets = [0, 96], sizes = [8, 32], strides = [1, 1]} : vector<8x128xf32> to vector<8x32xf32>
    %38 = math.tanh %36 : vector<8x32xf32>
    %39 = arith.mulf %37, %38 : vector<8x32xf32>
    %40 = vector.extract_strided_slice %12 {offsets = [8, 0], sizes = [8, 128], strides = [1, 1]} : vector<64x128xf32> to vector<8x128xf32>
    %cst_14 = arith.constant dense<0.000000e+00> : vector<8x128xf32>
    %41 = tpu.matmul %39, %14, %cst_14 {dimension_numbers = #tpu.dot_dimension_numbers<[1], [0], [0], [1], [0, 0, 1, 1], [], []>} : vector<8x32xf32>, vector<32x128xf32>, vector<8x128xf32> -> vector<8x128xf32>
    %42 = arith.addf %40, %41 : vector<8x128xf32>
    %43 = arith.addf %42, %42 : vector<8x128xf32>
    %44 = arith.select %5, %43, %42 : vector<8x128xi1>, vector<8x128xf32>
    %45 = arith.negf %44 : vector<8x128xf32>
    %46 = math.exp %45 : vector<8x128xf32>
    %cst_15 = arith.constant 1.000000e+00 : f32
    %47 = vector.broadcast %cst_15 : f32 to vector<8x128xf32>
    %48 = arith.addf %47, %46 : vector<8x128xf32>
    %49 = arith.divf %47, %48 : vector<8x128xf32>
    %50 = arith.addf %49, %49 : vector<8x128xf32>
    %cst_16 = arith.constant 1.000000e+00 : f32
    %51 = vector.broadcast %cst_16 : f32 to vector<8x128xf32>
    %52 = arith.subf %50, %51 : vector<8x128xf32>
    %53 = arith.select %5, %52, %49 : vector<8x128xi1>, vector<8x128xf32>
    %54 = vector.extract_strided_slice %53 {offsets = [0, 32], sizes = [8, 32], strides = [1, 1]} : vector<8x128xf32> to vector<8x32xf32>
    %55 = arith.mulf %54, %36 : vector<8x32xf32>
    %56 = vector.extract_strided_slice %53 {offsets = [0, 0], sizes = [8, 32], strides = [1, 1]} : vector<8x128xf32> to vector<8x32xf32>
    %57 = vector.extract_strided_slice %53 {offsets = [0, 64], sizes = [8, 32], strides = [1, 1]} : vector<8x128xf32> to vector<8x32xf32>
    %58 = arith.mulf %56, %57 : vector<8x32xf32>
    %59 = arith.addf %55, %58 : vector<8x32xf32>
    %60 = vector.extract_strided_slice %53 {offsets = [0, 96], sizes = [8, 32], strides = [1, 1]} : vector<8x128xf32> to vector<8x32xf32>
    %61 = math.tanh %59 : vector<8x32xf32>
    %62 = arith.mulf %60, %61 : vector<8x32xf32>
    %63 = vector.extract_strided_slice %12 {offsets = [16, 0], sizes = [8, 128], strides = [1, 1]} : vector<64x128xf32> to vector<8x128xf32>
    %cst_17 = arith.constant dense<0.000000e+00> : vector<8x128xf32>
    %64 = tpu.matmul %62, %14, %cst_17 {dimension_numbers = #tpu.dot_dimension_numbers<[1], [0], [0], [1], [0, 0, 1, 1], [], []>} : vector<8x32xf32>, vector<32x128xf32>, vector<8x128xf32> -> vector<8x128xf32>
    %65 = arith.addf %63, %64 : vector<8x128xf32>
    %66 = arith.addf %65, %65 : vector<8x128xf32>
    %67 = arith.select %5, %66, %65 : vector<8x128xi1>, vector<8x128xf32>
    %68 = arith.negf %67 : vector<8x128xf32>
    %69 = math.exp %68 : vector<8x128xf32>
    %cst_18 = arith.constant 1.000000e+00 : f32
    %70 = vector.broadcast %cst_18 : f32 to vector<8x128xf32>
    %71 = arith.addf %70, %69 : vector<8x128xf32>
    %72 = arith.divf %70, %71 : vector<8x128xf32>
    %73 = arith.addf %72, %72 : vector<8x128xf32>
    %cst_19 = arith.constant 1.000000e+00 : f32
    %74 = vector.broadcast %cst_19 : f32 to vector<8x128xf32>
    %75 = arith.subf %73, %74 : vector<8x128xf32>
    %76 = arith.select %5, %75, %72 : vector<8x128xi1>, vector<8x128xf32>
    %77 = vector.extract_strided_slice %76 {offsets = [0, 32], sizes = [8, 32], strides = [1, 1]} : vector<8x128xf32> to vector<8x32xf32>
    %78 = arith.mulf %77, %59 : vector<8x32xf32>
    %79 = vector.extract_strided_slice %76 {offsets = [0, 0], sizes = [8, 32], strides = [1, 1]} : vector<8x128xf32> to vector<8x32xf32>
    %80 = vector.extract_strided_slice %76 {offsets = [0, 64], sizes = [8, 32], strides = [1, 1]} : vector<8x128xf32> to vector<8x32xf32>
    %81 = arith.mulf %79, %80 : vector<8x32xf32>
    %82 = arith.addf %78, %81 : vector<8x32xf32>
    %83 = vector.extract_strided_slice %76 {offsets = [0, 96], sizes = [8, 32], strides = [1, 1]} : vector<8x128xf32> to vector<8x32xf32>
    %84 = math.tanh %82 : vector<8x32xf32>
    %85 = arith.mulf %83, %84 : vector<8x32xf32>
    %86 = vector.extract_strided_slice %12 {offsets = [24, 0], sizes = [8, 128], strides = [1, 1]} : vector<64x128xf32> to vector<8x128xf32>
    %cst_20 = arith.constant dense<0.000000e+00> : vector<8x128xf32>
    %87 = tpu.matmul %85, %14, %cst_20 {dimension_numbers = #tpu.dot_dimension_numbers<[1], [0], [0], [1], [0, 0, 1, 1], [], []>} : vector<8x32xf32>, vector<32x128xf32>, vector<8x128xf32> -> vector<8x128xf32>
    %88 = arith.addf %86, %87 : vector<8x128xf32>
    %89 = arith.addf %88, %88 : vector<8x128xf32>
    %90 = arith.select %5, %89, %88 : vector<8x128xi1>, vector<8x128xf32>
    %91 = arith.negf %90 : vector<8x128xf32>
    %92 = math.exp %91 : vector<8x128xf32>
    %cst_21 = arith.constant 1.000000e+00 : f32
    %93 = vector.broadcast %cst_21 : f32 to vector<8x128xf32>
    %94 = arith.addf %93, %92 : vector<8x128xf32>
    %95 = arith.divf %93, %94 : vector<8x128xf32>
    %96 = arith.addf %95, %95 : vector<8x128xf32>
    %cst_22 = arith.constant 1.000000e+00 : f32
    %97 = vector.broadcast %cst_22 : f32 to vector<8x128xf32>
    %98 = arith.subf %96, %97 : vector<8x128xf32>
    %99 = arith.select %5, %98, %95 : vector<8x128xi1>, vector<8x128xf32>
    %100 = vector.extract_strided_slice %99 {offsets = [0, 32], sizes = [8, 32], strides = [1, 1]} : vector<8x128xf32> to vector<8x32xf32>
    %101 = arith.mulf %100, %82 : vector<8x32xf32>
    %102 = vector.extract_strided_slice %99 {offsets = [0, 0], sizes = [8, 32], strides = [1, 1]} : vector<8x128xf32> to vector<8x32xf32>
    %103 = vector.extract_strided_slice %99 {offsets = [0, 64], sizes = [8, 32], strides = [1, 1]} : vector<8x128xf32> to vector<8x32xf32>
    %104 = arith.mulf %102, %103 : vector<8x32xf32>
    %105 = arith.addf %101, %104 : vector<8x32xf32>
    %106 = vector.extract_strided_slice %99 {offsets = [0, 96], sizes = [8, 32], strides = [1, 1]} : vector<8x128xf32> to vector<8x32xf32>
    %107 = math.tanh %105 : vector<8x32xf32>
    %108 = arith.mulf %106, %107 : vector<8x32xf32>
    %109 = vector.extract_strided_slice %12 {offsets = [32, 0], sizes = [8, 128], strides = [1, 1]} : vector<64x128xf32> to vector<8x128xf32>
    %cst_23 = arith.constant dense<0.000000e+00> : vector<8x128xf32>
    %110 = tpu.matmul %108, %14, %cst_23 {dimension_numbers = #tpu.dot_dimension_numbers<[1], [0], [0], [1], [0, 0, 1, 1], [], []>} : vector<8x32xf32>, vector<32x128xf32>, vector<8x128xf32> -> vector<8x128xf32>
    %111 = arith.addf %109, %110 : vector<8x128xf32>
    %112 = arith.addf %111, %111 : vector<8x128xf32>
    %113 = arith.select %5, %112, %111 : vector<8x128xi1>, vector<8x128xf32>
    %114 = arith.negf %113 : vector<8x128xf32>
    %115 = math.exp %114 : vector<8x128xf32>
    %cst_24 = arith.constant 1.000000e+00 : f32
    %116 = vector.broadcast %cst_24 : f32 to vector<8x128xf32>
    %117 = arith.addf %116, %115 : vector<8x128xf32>
    %118 = arith.divf %116, %117 : vector<8x128xf32>
    %119 = arith.addf %118, %118 : vector<8x128xf32>
    %cst_25 = arith.constant 1.000000e+00 : f32
    %120 = vector.broadcast %cst_25 : f32 to vector<8x128xf32>
    %121 = arith.subf %119, %120 : vector<8x128xf32>
    %122 = arith.select %5, %121, %118 : vector<8x128xi1>, vector<8x128xf32>
    %123 = vector.extract_strided_slice %122 {offsets = [0, 32], sizes = [8, 32], strides = [1, 1]} : vector<8x128xf32> to vector<8x32xf32>
    %124 = arith.mulf %123, %105 : vector<8x32xf32>
    %125 = vector.extract_strided_slice %122 {offsets = [0, 0], sizes = [8, 32], strides = [1, 1]} : vector<8x128xf32> to vector<8x32xf32>
    %126 = vector.extract_strided_slice %122 {offsets = [0, 64], sizes = [8, 32], strides = [1, 1]} : vector<8x128xf32> to vector<8x32xf32>
    %127 = arith.mulf %125, %126 : vector<8x32xf32>
    %128 = arith.addf %124, %127 : vector<8x32xf32>
    %129 = vector.extract_strided_slice %122 {offsets = [0, 96], sizes = [8, 32], strides = [1, 1]} : vector<8x128xf32> to vector<8x32xf32>
    %130 = math.tanh %128 : vector<8x32xf32>
    %131 = arith.mulf %129, %130 : vector<8x32xf32>
    %132 = vector.extract_strided_slice %12 {offsets = [40, 0], sizes = [8, 128], strides = [1, 1]} : vector<64x128xf32> to vector<8x128xf32>
    %cst_26 = arith.constant dense<0.000000e+00> : vector<8x128xf32>
    %133 = tpu.matmul %131, %14, %cst_26 {dimension_numbers = #tpu.dot_dimension_numbers<[1], [0], [0], [1], [0, 0, 1, 1], [], []>} : vector<8x32xf32>, vector<32x128xf32>, vector<8x128xf32> -> vector<8x128xf32>
    %134 = arith.addf %132, %133 : vector<8x128xf32>
    %135 = arith.addf %134, %134 : vector<8x128xf32>
    %136 = arith.select %5, %135, %134 : vector<8x128xi1>, vector<8x128xf32>
    %137 = arith.negf %136 : vector<8x128xf32>
    %138 = math.exp %137 : vector<8x128xf32>
    %cst_27 = arith.constant 1.000000e+00 : f32
    %139 = vector.broadcast %cst_27 : f32 to vector<8x128xf32>
    %140 = arith.addf %139, %138 : vector<8x128xf32>
    %141 = arith.divf %139, %140 : vector<8x128xf32>
    %142 = arith.addf %141, %141 : vector<8x128xf32>
    %cst_28 = arith.constant 1.000000e+00 : f32
    %143 = vector.broadcast %cst_28 : f32 to vector<8x128xf32>
    %144 = arith.subf %142, %143 : vector<8x128xf32>
    %145 = arith.select %5, %144, %141 : vector<8x128xi1>, vector<8x128xf32>
    %146 = vector.extract_strided_slice %145 {offsets = [0, 32], sizes = [8, 32], strides = [1, 1]} : vector<8x128xf32> to vector<8x32xf32>
    %147 = arith.mulf %146, %128 : vector<8x32xf32>
    %148 = vector.extract_strided_slice %145 {offsets = [0, 0], sizes = [8, 32], strides = [1, 1]} : vector<8x128xf32> to vector<8x32xf32>
    %149 = vector.extract_strided_slice %145 {offsets = [0, 64], sizes = [8, 32], strides = [1, 1]} : vector<8x128xf32> to vector<8x32xf32>
    %150 = arith.mulf %148, %149 : vector<8x32xf32>
    %151 = arith.addf %147, %150 : vector<8x32xf32>
    %152 = vector.extract_strided_slice %145 {offsets = [0, 96], sizes = [8, 32], strides = [1, 1]} : vector<8x128xf32> to vector<8x32xf32>
    %153 = math.tanh %151 : vector<8x32xf32>
    %154 = arith.mulf %152, %153 : vector<8x32xf32>
    %155 = vector.extract_strided_slice %12 {offsets = [48, 0], sizes = [8, 128], strides = [1, 1]} : vector<64x128xf32> to vector<8x128xf32>
    %cst_29 = arith.constant dense<0.000000e+00> : vector<8x128xf32>
    %156 = tpu.matmul %154, %14, %cst_29 {dimension_numbers = #tpu.dot_dimension_numbers<[1], [0], [0], [1], [0, 0, 1, 1], [], []>} : vector<8x32xf32>, vector<32x128xf32>, vector<8x128xf32> -> vector<8x128xf32>
    %157 = arith.addf %155, %156 : vector<8x128xf32>
    %158 = arith.addf %157, %157 : vector<8x128xf32>
    %159 = arith.select %5, %158, %157 : vector<8x128xi1>, vector<8x128xf32>
    %160 = arith.negf %159 : vector<8x128xf32>
    %161 = math.exp %160 : vector<8x128xf32>
    %cst_30 = arith.constant 1.000000e+00 : f32
    %162 = vector.broadcast %cst_30 : f32 to vector<8x128xf32>
    %163 = arith.addf %162, %161 : vector<8x128xf32>
    %164 = arith.divf %162, %163 : vector<8x128xf32>
    %165 = arith.addf %164, %164 : vector<8x128xf32>
    %cst_31 = arith.constant 1.000000e+00 : f32
    %166 = vector.broadcast %cst_31 : f32 to vector<8x128xf32>
    %167 = arith.subf %165, %166 : vector<8x128xf32>
    %168 = arith.select %5, %167, %164 : vector<8x128xi1>, vector<8x128xf32>
    %169 = vector.extract_strided_slice %168 {offsets = [0, 32], sizes = [8, 32], strides = [1, 1]} : vector<8x128xf32> to vector<8x32xf32>
    %170 = arith.mulf %169, %151 : vector<8x32xf32>
    %171 = vector.extract_strided_slice %168 {offsets = [0, 0], sizes = [8, 32], strides = [1, 1]} : vector<8x128xf32> to vector<8x32xf32>
    %172 = vector.extract_strided_slice %168 {offsets = [0, 64], sizes = [8, 32], strides = [1, 1]} : vector<8x128xf32> to vector<8x32xf32>
    %173 = arith.mulf %171, %172 : vector<8x32xf32>
    %174 = arith.addf %170, %173 : vector<8x32xf32>
    %175 = vector.extract_strided_slice %168 {offsets = [0, 96], sizes = [8, 32], strides = [1, 1]} : vector<8x128xf32> to vector<8x32xf32>
    %176 = math.tanh %174 : vector<8x32xf32>
    %177 = arith.mulf %175, %176 : vector<8x32xf32>
    %178 = vector.extract_strided_slice %12 {offsets = [56, 0], sizes = [8, 128], strides = [1, 1]} : vector<64x128xf32> to vector<8x128xf32>
    %cst_32 = arith.constant dense<0.000000e+00> : vector<8x128xf32>
    %179 = tpu.matmul %177, %14, %cst_32 {dimension_numbers = #tpu.dot_dimension_numbers<[1], [0], [0], [1], [0, 0, 1, 1], [], []>} : vector<8x32xf32>, vector<32x128xf32>, vector<8x128xf32> -> vector<8x128xf32>
    %180 = arith.addf %178, %179 : vector<8x128xf32>
    %181 = arith.addf %180, %180 : vector<8x128xf32>
    %182 = arith.select %5, %181, %180 : vector<8x128xi1>, vector<8x128xf32>
    %183 = arith.negf %182 : vector<8x128xf32>
    %184 = math.exp %183 : vector<8x128xf32>
    %cst_33 = arith.constant 1.000000e+00 : f32
    %185 = vector.broadcast %cst_33 : f32 to vector<8x128xf32>
    %186 = arith.addf %185, %184 : vector<8x128xf32>
    %187 = arith.divf %185, %186 : vector<8x128xf32>
    %188 = arith.addf %187, %187 : vector<8x128xf32>
    %cst_34 = arith.constant 1.000000e+00 : f32
    %189 = vector.broadcast %cst_34 : f32 to vector<8x128xf32>
    %190 = arith.subf %188, %189 : vector<8x128xf32>
    %191 = arith.select %5, %190, %187 : vector<8x128xi1>, vector<8x128xf32>
    %192 = vector.extract_strided_slice %191 {offsets = [0, 32], sizes = [8, 32], strides = [1, 1]} : vector<8x128xf32> to vector<8x32xf32>
    %193 = arith.mulf %192, %174 : vector<8x32xf32>
    %194 = vector.extract_strided_slice %191 {offsets = [0, 0], sizes = [8, 32], strides = [1, 1]} : vector<8x128xf32> to vector<8x32xf32>
    %195 = vector.extract_strided_slice %191 {offsets = [0, 64], sizes = [8, 32], strides = [1, 1]} : vector<8x128xf32> to vector<8x32xf32>
    %196 = arith.mulf %194, %195 : vector<8x32xf32>
    %197 = arith.addf %193, %196 : vector<8x32xf32>
    %198 = vector.extract_strided_slice %191 {offsets = [0, 96], sizes = [8, 32], strides = [1, 1]} : vector<8x128xf32> to vector<8x32xf32>
    %199 = math.tanh %197 : vector<8x32xf32>
    %200 = arith.mulf %198, %199 : vector<8x32xf32>
    %201 = tpu.concatenate %39, %62, %85, %108, %131, %154, %177, %200 in 0 : vector<8x32xf32>, vector<8x32xf32>, vector<8x32xf32>, vector<8x32xf32>, vector<8x32xf32>, vector<8x32xf32>, vector<8x32xf32>, vector<8x32xf32> -> vector<64x32xf32>
    %c1 = arith.constant 1 : index
    %c0_35 = arith.constant 0 : index
    %c0_36 = arith.constant 0 : index
    %202 = vector.load %arg2[%c1, %c0_35, %c0_36] : memref<3x32x128xf32, #tpu.memory_space<vmem>>, vector<1x32x128xf32>
    %203 = vector.shape_cast %202 : vector<1x32x128xf32> to vector<32x128xf32>
    %cst_37 = arith.constant dense<0.000000e+00> : vector<64x128xf32>
    %204 = tpu.matmul %201, %203, %cst_37 {dimension_numbers = #tpu.dot_dimension_numbers<[1], [0], [0], [1], [0, 0, 1, 1], [], []>} : vector<64x32xf32>, vector<32x128xf32>, vector<64x128xf32> -> vector<64x128xf32>
    %c1_38 = arith.constant 1 : index
    %c0_39 = arith.constant 0 : index
    %c0_40 = arith.constant 0 : index
    %205 = vector.load %arg3[%c1_38, %c0_39, %c0_40] : memref<2x1x128xf32, #tpu.memory_space<vmem>>, vector<1x1x128xf32>
    %206 = vector.shape_cast %205 : vector<1x1x128xf32> to vector<1x128xf32>
    %207 = vector.broadcast %206 : vector<1x128xf32> to vector<64x128xf32>
    %208 = arith.addf %204, %207 : vector<64x128xf32>
    %c2 = arith.constant 2 : index
    %c0_41 = arith.constant 0 : index
    %c0_42 = arith.constant 0 : index
    %209 = vector.load %arg2[%c2, %c0_41, %c0_42] : memref<3x32x128xf32, #tpu.memory_space<vmem>>, vector<1x32x128xf32>
    %210 = vector.shape_cast %209 : vector<1x32x128xf32> to vector<32x128xf32>
    %cst_43 = arith.constant 0.000000e+00 : f32
    %211 = vector.broadcast %cst_43 : f32 to vector<8x32xf32>
    %cst_44 = arith.constant 0.000000e+00 : f32
    %212 = vector.broadcast %cst_44 : f32 to vector<8x32xf32>
    %213 = vector.extract_strided_slice %208 {offsets = [0, 0], sizes = [8, 128], strides = [1, 1]} : vector<64x128xf32> to vector<8x128xf32>
    %cst_45 = arith.constant dense<0.000000e+00> : vector<8x128xf32>
    %214 = tpu.matmul %211, %210, %cst_45 {dimension_numbers = #tpu.dot_dimension_numbers<[1], [0], [0], [1], [0, 0, 1, 1], [], []>} : vector<8x32xf32>, vector<32x128xf32>, vector<8x128xf32> -> vector<8x128xf32>
    %215 = arith.addf %213, %214 : vector<8x128xf32>
    %216 = arith.addf %215, %215 : vector<8x128xf32>
    %217 = arith.select %5, %216, %215 : vector<8x128xi1>, vector<8x128xf32>
    %218 = arith.negf %217 : vector<8x128xf32>
    %219 = math.exp %218 : vector<8x128xf32>
    %cst_46 = arith.constant 1.000000e+00 : f32
    %220 = vector.broadcast %cst_46 : f32 to vector<8x128xf32>
    %221 = arith.addf %220, %219 : vector<8x128xf32>
    %222 = arith.divf %220, %221 : vector<8x128xf32>
    %223 = arith.addf %222, %222 : vector<8x128xf32>
    %cst_47 = arith.constant 1.000000e+00 : f32
    %224 = vector.broadcast %cst_47 : f32 to vector<8x128xf32>
    %225 = arith.subf %223, %224 : vector<8x128xf32>
    %226 = arith.select %5, %225, %222 : vector<8x128xi1>, vector<8x128xf32>
    %227 = vector.extract_strided_slice %226 {offsets = [0, 32], sizes = [8, 32], strides = [1, 1]} : vector<8x128xf32> to vector<8x32xf32>
    %228 = arith.mulf %227, %212 : vector<8x32xf32>
    %229 = vector.extract_strided_slice %226 {offsets = [0, 0], sizes = [8, 32], strides = [1, 1]} : vector<8x128xf32> to vector<8x32xf32>
    %230 = vector.extract_strided_slice %226 {offsets = [0, 64], sizes = [8, 32], strides = [1, 1]} : vector<8x128xf32> to vector<8x32xf32>
    %231 = arith.mulf %229, %230 : vector<8x32xf32>
    %232 = arith.addf %228, %231 : vector<8x32xf32>
    %233 = vector.extract_strided_slice %226 {offsets = [0, 96], sizes = [8, 32], strides = [1, 1]} : vector<8x128xf32> to vector<8x32xf32>
    %234 = math.tanh %232 : vector<8x32xf32>
    %235 = arith.mulf %233, %234 : vector<8x32xf32>
    %236 = vector.extract_strided_slice %208 {offsets = [8, 0], sizes = [8, 128], strides = [1, 1]} : vector<64x128xf32> to vector<8x128xf32>
    %cst_48 = arith.constant dense<0.000000e+00> : vector<8x128xf32>
    %237 = tpu.matmul %235, %210, %cst_48 {dimension_numbers = #tpu.dot_dimension_numbers<[1], [0], [0], [1], [0, 0, 1, 1], [], []>} : vector<8x32xf32>, vector<32x128xf32>, vector<8x128xf32> -> vector<8x128xf32>
    %238 = arith.addf %236, %237 : vector<8x128xf32>
    %239 = arith.addf %238, %238 : vector<8x128xf32>
    %240 = arith.select %5, %239, %238 : vector<8x128xi1>, vector<8x128xf32>
    %241 = arith.negf %240 : vector<8x128xf32>
    %242 = math.exp %241 : vector<8x128xf32>
    %cst_49 = arith.constant 1.000000e+00 : f32
    %243 = vector.broadcast %cst_49 : f32 to vector<8x128xf32>
    %244 = arith.addf %243, %242 : vector<8x128xf32>
    %245 = arith.divf %243, %244 : vector<8x128xf32>
    %246 = arith.addf %245, %245 : vector<8x128xf32>
    %cst_50 = arith.constant 1.000000e+00 : f32
    %247 = vector.broadcast %cst_50 : f32 to vector<8x128xf32>
    %248 = arith.subf %246, %247 : vector<8x128xf32>
    %249 = arith.select %5, %248, %245 : vector<8x128xi1>, vector<8x128xf32>
    %250 = vector.extract_strided_slice %249 {offsets = [0, 32], sizes = [8, 32], strides = [1, 1]} : vector<8x128xf32> to vector<8x32xf32>
    %251 = arith.mulf %250, %232 : vector<8x32xf32>
    %252 = vector.extract_strided_slice %249 {offsets = [0, 0], sizes = [8, 32], strides = [1, 1]} : vector<8x128xf32> to vector<8x32xf32>
    %253 = vector.extract_strided_slice %249 {offsets = [0, 64], sizes = [8, 32], strides = [1, 1]} : vector<8x128xf32> to vector<8x32xf32>
    %254 = arith.mulf %252, %253 : vector<8x32xf32>
    %255 = arith.addf %251, %254 : vector<8x32xf32>
    %256 = vector.extract_strided_slice %249 {offsets = [0, 96], sizes = [8, 32], strides = [1, 1]} : vector<8x128xf32> to vector<8x32xf32>
    %257 = math.tanh %255 : vector<8x32xf32>
    %258 = arith.mulf %256, %257 : vector<8x32xf32>
    %259 = vector.extract_strided_slice %208 {offsets = [16, 0], sizes = [8, 128], strides = [1, 1]} : vector<64x128xf32> to vector<8x128xf32>
    %cst_51 = arith.constant dense<0.000000e+00> : vector<8x128xf32>
    %260 = tpu.matmul %258, %210, %cst_51 {dimension_numbers = #tpu.dot_dimension_numbers<[1], [0], [0], [1], [0, 0, 1, 1], [], []>} : vector<8x32xf32>, vector<32x128xf32>, vector<8x128xf32> -> vector<8x128xf32>
    %261 = arith.addf %259, %260 : vector<8x128xf32>
    %262 = arith.addf %261, %261 : vector<8x128xf32>
    %263 = arith.select %5, %262, %261 : vector<8x128xi1>, vector<8x128xf32>
    %264 = arith.negf %263 : vector<8x128xf32>
    %265 = math.exp %264 : vector<8x128xf32>
    %cst_52 = arith.constant 1.000000e+00 : f32
    %266 = vector.broadcast %cst_52 : f32 to vector<8x128xf32>
    %267 = arith.addf %266, %265 : vector<8x128xf32>
    %268 = arith.divf %266, %267 : vector<8x128xf32>
    %269 = arith.addf %268, %268 : vector<8x128xf32>
    %cst_53 = arith.constant 1.000000e+00 : f32
    %270 = vector.broadcast %cst_53 : f32 to vector<8x128xf32>
    %271 = arith.subf %269, %270 : vector<8x128xf32>
    %272 = arith.select %5, %271, %268 : vector<8x128xi1>, vector<8x128xf32>
    %273 = vector.extract_strided_slice %272 {offsets = [0, 32], sizes = [8, 32], strides = [1, 1]} : vector<8x128xf32> to vector<8x32xf32>
    %274 = arith.mulf %273, %255 : vector<8x32xf32>
    %275 = vector.extract_strided_slice %272 {offsets = [0, 0], sizes = [8, 32], strides = [1, 1]} : vector<8x128xf32> to vector<8x32xf32>
    %276 = vector.extract_strided_slice %272 {offsets = [0, 64], sizes = [8, 32], strides = [1, 1]} : vector<8x128xf32> to vector<8x32xf32>
    %277 = arith.mulf %275, %276 : vector<8x32xf32>
    %278 = arith.addf %274, %277 : vector<8x32xf32>
    %279 = vector.extract_strided_slice %272 {offsets = [0, 96], sizes = [8, 32], strides = [1, 1]} : vector<8x128xf32> to vector<8x32xf32>
    %280 = math.tanh %278 : vector<8x32xf32>
    %281 = arith.mulf %279, %280 : vector<8x32xf32>
    %282 = vector.extract_strided_slice %208 {offsets = [24, 0], sizes = [8, 128], strides = [1, 1]} : vector<64x128xf32> to vector<8x128xf32>
    %cst_54 = arith.constant dense<0.000000e+00> : vector<8x128xf32>
    %283 = tpu.matmul %281, %210, %cst_54 {dimension_numbers = #tpu.dot_dimension_numbers<[1], [0], [0], [1], [0, 0, 1, 1], [], []>} : vector<8x32xf32>, vector<32x128xf32>, vector<8x128xf32> -> vector<8x128xf32>
    %284 = arith.addf %282, %283 : vector<8x128xf32>
    %285 = arith.addf %284, %284 : vector<8x128xf32>
    %286 = arith.select %5, %285, %284 : vector<8x128xi1>, vector<8x128xf32>
    %287 = arith.negf %286 : vector<8x128xf32>
    %288 = math.exp %287 : vector<8x128xf32>
    %cst_55 = arith.constant 1.000000e+00 : f32
    %289 = vector.broadcast %cst_55 : f32 to vector<8x128xf32>
    %290 = arith.addf %289, %288 : vector<8x128xf32>
    %291 = arith.divf %289, %290 : vector<8x128xf32>
    %292 = arith.addf %291, %291 : vector<8x128xf32>
    %cst_56 = arith.constant 1.000000e+00 : f32
    %293 = vector.broadcast %cst_56 : f32 to vector<8x128xf32>
    %294 = arith.subf %292, %293 : vector<8x128xf32>
    %295 = arith.select %5, %294, %291 : vector<8x128xi1>, vector<8x128xf32>
    %296 = vector.extract_strided_slice %295 {offsets = [0, 32], sizes = [8, 32], strides = [1, 1]} : vector<8x128xf32> to vector<8x32xf32>
    %297 = arith.mulf %296, %278 : vector<8x32xf32>
    %298 = vector.extract_strided_slice %295 {offsets = [0, 0], sizes = [8, 32], strides = [1, 1]} : vector<8x128xf32> to vector<8x32xf32>
    %299 = vector.extract_strided_slice %295 {offsets = [0, 64], sizes = [8, 32], strides = [1, 1]} : vector<8x128xf32> to vector<8x32xf32>
    %300 = arith.mulf %298, %299 : vector<8x32xf32>
    %301 = arith.addf %297, %300 : vector<8x32xf32>
    %302 = vector.extract_strided_slice %295 {offsets = [0, 96], sizes = [8, 32], strides = [1, 1]} : vector<8x128xf32> to vector<8x32xf32>
    %303 = math.tanh %301 : vector<8x32xf32>
    %304 = arith.mulf %302, %303 : vector<8x32xf32>
    %305 = vector.extract_strided_slice %208 {offsets = [32, 0], sizes = [8, 128], strides = [1, 1]} : vector<64x128xf32> to vector<8x128xf32>
    %cst_57 = arith.constant dense<0.000000e+00> : vector<8x128xf32>
    %306 = tpu.matmul %304, %210, %cst_57 {dimension_numbers = #tpu.dot_dimension_numbers<[1], [0], [0], [1], [0, 0, 1, 1], [], []>} : vector<8x32xf32>, vector<32x128xf32>, vector<8x128xf32> -> vector<8x128xf32>
    %307 = arith.addf %305, %306 : vector<8x128xf32>
    %308 = arith.addf %307, %307 : vector<8x128xf32>
    %309 = arith.select %5, %308, %307 : vector<8x128xi1>, vector<8x128xf32>
    %310 = arith.negf %309 : vector<8x128xf32>
    %311 = math.exp %310 : vector<8x128xf32>
    %cst_58 = arith.constant 1.000000e+00 : f32
    %312 = vector.broadcast %cst_58 : f32 to vector<8x128xf32>
    %313 = arith.addf %312, %311 : vector<8x128xf32>
    %314 = arith.divf %312, %313 : vector<8x128xf32>
    %315 = arith.addf %314, %314 : vector<8x128xf32>
    %cst_59 = arith.constant 1.000000e+00 : f32
    %316 = vector.broadcast %cst_59 : f32 to vector<8x128xf32>
    %317 = arith.subf %315, %316 : vector<8x128xf32>
    %318 = arith.select %5, %317, %314 : vector<8x128xi1>, vector<8x128xf32>
    %319 = vector.extract_strided_slice %318 {offsets = [0, 32], sizes = [8, 32], strides = [1, 1]} : vector<8x128xf32> to vector<8x32xf32>
    %320 = arith.mulf %319, %301 : vector<8x32xf32>
    %321 = vector.extract_strided_slice %318 {offsets = [0, 0], sizes = [8, 32], strides = [1, 1]} : vector<8x128xf32> to vector<8x32xf32>
    %322 = vector.extract_strided_slice %318 {offsets = [0, 64], sizes = [8, 32], strides = [1, 1]} : vector<8x128xf32> to vector<8x32xf32>
    %323 = arith.mulf %321, %322 : vector<8x32xf32>
    %324 = arith.addf %320, %323 : vector<8x32xf32>
    %325 = vector.extract_strided_slice %318 {offsets = [0, 96], sizes = [8, 32], strides = [1, 1]} : vector<8x128xf32> to vector<8x32xf32>
    %326 = math.tanh %324 : vector<8x32xf32>
    %327 = arith.mulf %325, %326 : vector<8x32xf32>
    %328 = vector.extract_strided_slice %208 {offsets = [40, 0], sizes = [8, 128], strides = [1, 1]} : vector<64x128xf32> to vector<8x128xf32>
    %cst_60 = arith.constant dense<0.000000e+00> : vector<8x128xf32>
    %329 = tpu.matmul %327, %210, %cst_60 {dimension_numbers = #tpu.dot_dimension_numbers<[1], [0], [0], [1], [0, 0, 1, 1], [], []>} : vector<8x32xf32>, vector<32x128xf32>, vector<8x128xf32> -> vector<8x128xf32>
    %330 = arith.addf %328, %329 : vector<8x128xf32>
    %331 = arith.addf %330, %330 : vector<8x128xf32>
    %332 = arith.select %5, %331, %330 : vector<8x128xi1>, vector<8x128xf32>
    %333 = arith.negf %332 : vector<8x128xf32>
    %334 = math.exp %333 : vector<8x128xf32>
    %cst_61 = arith.constant 1.000000e+00 : f32
    %335 = vector.broadcast %cst_61 : f32 to vector<8x128xf32>
    %336 = arith.addf %335, %334 : vector<8x128xf32>
    %337 = arith.divf %335, %336 : vector<8x128xf32>
    %338 = arith.addf %337, %337 : vector<8x128xf32>
    %cst_62 = arith.constant 1.000000e+00 : f32
    %339 = vector.broadcast %cst_62 : f32 to vector<8x128xf32>
    %340 = arith.subf %338, %339 : vector<8x128xf32>
    %341 = arith.select %5, %340, %337 : vector<8x128xi1>, vector<8x128xf32>
    %342 = vector.extract_strided_slice %341 {offsets = [0, 32], sizes = [8, 32], strides = [1, 1]} : vector<8x128xf32> to vector<8x32xf32>
    %343 = arith.mulf %342, %324 : vector<8x32xf32>
    %344 = vector.extract_strided_slice %341 {offsets = [0, 0], sizes = [8, 32], strides = [1, 1]} : vector<8x128xf32> to vector<8x32xf32>
    %345 = vector.extract_strided_slice %341 {offsets = [0, 64], sizes = [8, 32], strides = [1, 1]} : vector<8x128xf32> to vector<8x32xf32>
    %346 = arith.mulf %344, %345 : vector<8x32xf32>
    %347 = arith.addf %343, %346 : vector<8x32xf32>
    %348 = vector.extract_strided_slice %341 {offsets = [0, 96], sizes = [8, 32], strides = [1, 1]} : vector<8x128xf32> to vector<8x32xf32>
    %349 = math.tanh %347 : vector<8x32xf32>
    %350 = arith.mulf %348, %349 : vector<8x32xf32>
    %351 = vector.extract_strided_slice %208 {offsets = [48, 0], sizes = [8, 128], strides = [1, 1]} : vector<64x128xf32> to vector<8x128xf32>
    %cst_63 = arith.constant dense<0.000000e+00> : vector<8x128xf32>
    %352 = tpu.matmul %350, %210, %cst_63 {dimension_numbers = #tpu.dot_dimension_numbers<[1], [0], [0], [1], [0, 0, 1, 1], [], []>} : vector<8x32xf32>, vector<32x128xf32>, vector<8x128xf32> -> vector<8x128xf32>
    %353 = arith.addf %351, %352 : vector<8x128xf32>
    %354 = arith.addf %353, %353 : vector<8x128xf32>
    %355 = arith.select %5, %354, %353 : vector<8x128xi1>, vector<8x128xf32>
    %356 = arith.negf %355 : vector<8x128xf32>
    %357 = math.exp %356 : vector<8x128xf32>
    %cst_64 = arith.constant 1.000000e+00 : f32
    %358 = vector.broadcast %cst_64 : f32 to vector<8x128xf32>
    %359 = arith.addf %358, %357 : vector<8x128xf32>
    %360 = arith.divf %358, %359 : vector<8x128xf32>
    %361 = arith.addf %360, %360 : vector<8x128xf32>
    %cst_65 = arith.constant 1.000000e+00 : f32
    %362 = vector.broadcast %cst_65 : f32 to vector<8x128xf32>
    %363 = arith.subf %361, %362 : vector<8x128xf32>
    %364 = arith.select %5, %363, %360 : vector<8x128xi1>, vector<8x128xf32>
    %365 = vector.extract_strided_slice %364 {offsets = [0, 32], sizes = [8, 32], strides = [1, 1]} : vector<8x128xf32> to vector<8x32xf32>
    %366 = arith.mulf %365, %347 : vector<8x32xf32>
    %367 = vector.extract_strided_slice %364 {offsets = [0, 0], sizes = [8, 32], strides = [1, 1]} : vector<8x128xf32> to vector<8x32xf32>
    %368 = vector.extract_strided_slice %364 {offsets = [0, 64], sizes = [8, 32], strides = [1, 1]} : vector<8x128xf32> to vector<8x32xf32>
    %369 = arith.mulf %367, %368 : vector<8x32xf32>
    %370 = arith.addf %366, %369 : vector<8x32xf32>
    %371 = vector.extract_strided_slice %364 {offsets = [0, 96], sizes = [8, 32], strides = [1, 1]} : vector<8x128xf32> to vector<8x32xf32>
    %372 = math.tanh %370 : vector<8x32xf32>
    %373 = arith.mulf %371, %372 : vector<8x32xf32>
    %374 = vector.extract_strided_slice %208 {offsets = [56, 0], sizes = [8, 128], strides = [1, 1]} : vector<64x128xf32> to vector<8x128xf32>
    %cst_66 = arith.constant dense<0.000000e+00> : vector<8x128xf32>
    %375 = tpu.matmul %373, %210, %cst_66 {dimension_numbers = #tpu.dot_dimension_numbers<[1], [0], [0], [1], [0, 0, 1, 1], [], []>} : vector<8x32xf32>, vector<32x128xf32>, vector<8x128xf32> -> vector<8x128xf32>
    %376 = arith.addf %374, %375 : vector<8x128xf32>
    %377 = arith.addf %376, %376 : vector<8x128xf32>
    %378 = arith.select %5, %377, %376 : vector<8x128xi1>, vector<8x128xf32>
    %379 = arith.negf %378 : vector<8x128xf32>
    %380 = math.exp %379 : vector<8x128xf32>
    %cst_67 = arith.constant 1.000000e+00 : f32
    %381 = vector.broadcast %cst_67 : f32 to vector<8x128xf32>
    %382 = arith.addf %381, %380 : vector<8x128xf32>
    %383 = arith.divf %381, %382 : vector<8x128xf32>
    %384 = arith.addf %383, %383 : vector<8x128xf32>
    %cst_68 = arith.constant 1.000000e+00 : f32
    %385 = vector.broadcast %cst_68 : f32 to vector<8x128xf32>
    %386 = arith.subf %384, %385 : vector<8x128xf32>
    %387 = arith.select %5, %386, %383 : vector<8x128xi1>, vector<8x128xf32>
    %388 = vector.extract_strided_slice %387 {offsets = [0, 32], sizes = [8, 32], strides = [1, 1]} : vector<8x128xf32> to vector<8x32xf32>
    %389 = arith.mulf %388, %370 : vector<8x32xf32>
    %390 = vector.extract_strided_slice %387 {offsets = [0, 0], sizes = [8, 32], strides = [1, 1]} : vector<8x128xf32> to vector<8x32xf32>
    %391 = vector.extract_strided_slice %387 {offsets = [0, 64], sizes = [8, 32], strides = [1, 1]} : vector<8x128xf32> to vector<8x32xf32>
    %392 = arith.mulf %390, %391 : vector<8x32xf32>
    %393 = arith.addf %389, %392 : vector<8x32xf32>
    %394 = vector.extract_strided_slice %387 {offsets = [0, 96], sizes = [8, 32], strides = [1, 1]} : vector<8x128xf32> to vector<8x32xf32>
    %395 = math.tanh %393 : vector<8x32xf32>
    %396 = arith.mulf %394, %395 : vector<8x32xf32>
    %397 = tpu.concatenate %235, %258, %281, %304, %327, %350, %373, %396 in 1 : vector<8x32xf32>, vector<8x32xf32>, vector<8x32xf32>, vector<8x32xf32>, vector<8x32xf32>, vector<8x32xf32>, vector<8x32xf32>, vector<8x32xf32> -> vector<8x256xf32>
    %c0_69 = arith.constant 0 : index
    %c0_70 = arith.constant 0 : index
    %398 = vector.load %arg4[%c0_69, %c0_70] : memref<257x64xf32, #tpu.memory_space<vmem>>, vector<256x64xf32>
    %c256 = arith.constant 256 : index
    %c0_71 = arith.constant 0 : index
    %399 = vector.load %arg4[%c256, %c0_71] : memref<257x64xf32, #tpu.memory_space<vmem>>, vector<1x64xf32>
    %cst_72 = arith.constant dense<0.000000e+00> : vector<8x64xf32>
    %400 = tpu.matmul %397, %398, %cst_72 {dimension_numbers = #tpu.dot_dimension_numbers<[1], [0], [0], [1], [0, 0, 1, 1], [], []>} : vector<8x256xf32>, vector<256x64xf32>, vector<8x64xf32> -> vector<8x64xf32>
    %401 = vector.broadcast %399 : vector<1x64xf32> to vector<8x64xf32>
    %402 = arith.addf %400, %401 : vector<8x64xf32>
    %c0_73 = arith.constant 0 : index
    %c0_74 = arith.constant 0 : index
    %403 = vector.load %arg5[%c0_73, %c0_74] : memref<8x64xf32, #tpu.memory_space<vmem>>, vector<8x64xf32>
    tpu.vector_store %arg5[%c0_73, %c0_74], %402 {strides = array<i32>} : memref<8x64xf32, #tpu.memory_space<vmem>>, vector<8x64xf32>,
    return
  }
}

</mosaic_0001>

<bundles_post_ra>
// kernel: tpu_custom_call.1
= control target key start
LH: loop header
LB: loop body
LE: loop exit
PB: predicated region body
PF: predicated region fallthrough
CT: control target
= control target key end

     0   :  { %vm43_vm0 = vcmask 130048   ;;  %v2664_v5 = vmov 0.0   ;;  %s3316_s0 = inlined_call_operand.vmem [shape: f32[64,16], index: 0, kind: input, shape index: {}]   ;;  %s3317_s1 = inlined_call_operand.vmem [shape: f32[16,128], index: 1, kind: input, shape index: {}]   ;;  %s3318_s2 = inlined_call_operand.vmem [shape: f32[3,32,128], index: 2, kind: input, shape index: {}]   ;;  %s3319_s3 = inlined_call_operand.vmem [shape: f32[2,1,128], index: 3, kind: input, shape index: {}]   ;;  %s3320_s4 = inlined_call_operand.vmem [shape: f32[257,64], index: 4, kind: input, shape index: {}]   ;;  %s3321_s5 = inlined_call_operand.hbm [shape: f32[8,64], index: 5, kind: output, shape index: {}]  }
   0x1   :  { %v35_v0 = vld [vmem:[%s3317_s1 + $0x8] sm:$0xff]  ;;  %v34_v1 = vld [vmem:[%s3317_s1] sm:$0xff]  ;;  %v2716_v4 = vld [vmem:[%s3318_s2 + $0x18] sm:$0xff]  ;;  %2356 = vmatprep.subr.mxu0 %v2664_v5 }
   0x2   :  { %v26_v2 = vld [vmem:[%s3316_s0] sm:$0xff]  ;;  %2318 = vmatprep.subr.mxu1 %v35_v0  ;;  %v27_v3 = vld [vmem:[%s3316_s0 + $0x8] sm:$0xff]  ;;  %v28_v6 = vld [vmem:[%s3316_s0 + $0x10] sm:$0xff]  ;;  %2357 = vmatpush3.msra.mxu0 %v2716_v4 }
   0x3   :  { %2322 = vmatprep.mubr.msk.f32.mxu1 %vm43_vm0, %v26_v2  ;;  %2319 = vmatpush3.msra.mxu1 %v35_v0 }
   0x4   :  { %2320 = vmatprep.subr.mxu1 %v34_v1  ;;  %2358 = vmatprep.subr.mxu0 %v2664_v5 }
   0x5   :  { %2321 = vmatpush3.msra.mxu1 %v34_v1 }
   0x6   :  { %10 = vsyncpa [#allocation3], 0  ;;  %2323 = vmatmul.mubr.msk.f32.vlgmr.msra.gmra.mxu1 %vm43_vm0, %v27_v3  ;;  %2334 = vmatprep.subr.mxu1 %v2664_v5  ;;  %v2729_v7 = vld [vmem:[%s3318_s2 + $0x10] sm:$0xff]  ;;  %v29_v8 = vld [vmem:[%s3316_s0 + $0x18] sm:$0xff]  ;;  %vm2665_vm1 = vmmov 0   ;;  %v21_v23 = vlaneseq  ;;  %s2666_s21 = smov 64  }
   0x7   :  { %2335 = vmatpush3.msra.mxu1 %v2716_v4  ;;  %2325 = vmatprep.mubr.msk.f32.mxu1 %vm43_vm0, %v28_v6  ;;  %v30_v9 = vld [vmem:[%s3316_s0 + $0x20] sm:$0xff]  ;;  %v2743_v10 = vld [vmem:[%s3318_s2 + $0x8] sm:$0xff]  ;;  %v32_v13 = vld [vmem:[%s3316_s0 + $0x30] sm:$0xff]  ;;  %s2667_s22 = smov 32   ;;  %vm177_vm5 = vcmask 261120   ;;  %s2668_s20 = smov 96  }
   0x8   :  { %2336 = vmatprep.subr.mxu1 %v2664_v5  ;;  %2359 = vmatpush3.msra.mxu0 %v2729_v7  ;;  %v2753_v11 = vld [vmem:[%s3318_s2] sm:$0xff]  ;;  %v31_v12 = vld [vmem:[%s3316_s0 + $0x28] sm:$0xff]  ;;  %v33_v14 = vld [vmem:[%s3316_s0 + $0x38] sm:$0xff]  ;;  %v22_v28 = vand.u32 127, %v21_v23  ;;  %vm1978_vm6 = vcmask 523264   ;;  %vm1980_vm7 = vcmask 785408  }
   0x9   :  { %2337 = vmatpush3.msra.mxu1 %v2729_v7  ;;  %2360 = vmatprep.subr.mxu0 %v2664_v5  ;;  %v2107_v15 = vld [vmem:[%s3319_s3] ss:$0 sm:$0xff]  ;;  %v2000_v36 = vld [vmem:[%s3320_s4 + $0x78] sm:$0xff]  ;;  %s2669_s23 = smov [#allocation2]  }
   0xa   :  { %2326 = vmatmul.mubr.msk.f32.gmra.mxu1 %vm43_vm0, %v29_v8  ;;  %2338 = vmatprep.subr.mxu1 %v2664_v5  ;;  %vm23_vm2 = vcmp.ge.s32.totalorder %v22_v28, 64  ;;  %vm24_vm3 = vcmp.lt.s32.totalorder %v22_v28, 96  ;;  %s2099_s24 = sshll.u32 %s2669_s23, 4  ;;  %s2100_s24 = int_to_ptr.vmem [resolvable:$true] %s2099_s24 }
   0xb   :  { %2328 = vmatprep.mubr.msk.f32.mxu1 %vm43_vm0, %v30_v9  ;;  %2339 = vmatpush3.msra.mxu1 %v2743_v10  ;;  %vm2806_vm4 = vmand %vm23_vm2, %vm24_vm3  ;;  %s2642_s25 = scalar_lea.vmem %s2100_s24, 128  ;;  %p2647_p1 = scmp.lt.s32.totalorder %s2100_s24, %s2100_s24 }
   0xc   :  { %2340 = vmatprep.subr.mxu1 %v2664_v5  ;;  %2361 = vmatpush3.msra.mxu0 %v2743_v10  ;;  %p2643_p0 = scmp.ne.s32.totalorder %s2100_s24, %s2642_s25  ;;  %p2648_p2 = scmp.lt.s32.totalorder %s2642_s25, %s2642_s25 }
   0xd   :  { %2341 = vmatpush3.msra.mxu1 %v2753_v11  ;;  %2362 = vmatprep.subr.mxu0 %v2664_v5 }
   0xe   :  { %2329 = vmatmul.mubr.msk.f32.gmra.mxu1 %vm43_vm0, %v31_v12  ;;  %2345 = vmatprep.subr.mxu1 %v2664_v5  ;;  %p2649_p3 = por %p2648_p2, %p2647_p1 }
   0xf   :  { %2331 = vmatprep.mubr.msk.f32.mxu1 %vm43_vm0, %v32_v13  ;;  %2363 = vmatpush3.msra.mxu0 %v2753_v11 }
  0x10   :  { %2364 = vmatprep.mubr.msk.f32.mxu0 %vm2665_vm1, %v2664_v5  ;;  %2378 = vmatprep.subr.mxu0 %v2664_v5  ;;  %p2650_p4 = pnand %p2649_p3, %p2643_p0 }
  0x12   :  { %2332 = vmatmul.mubr.msk.f32.gmra.mxu1 %vm43_vm0, %v33_v14 }
  0x13   :  { %2342 = vmatprep.mubr.msk.f32.mxu1 %vm2665_vm1, %v2664_v5 }
  0x16   :  { %2343 = vmatmul.mubr.f32.vlgmr.msra.gmra.mxu1 %v2664_v5 }
  0x17   :  { %2346 = vmatpush3.msra.mxu1 %v2716_v4  ;;  %2353 = vmatprep.mubr.msk.f32.mxu1 %vm2665_vm1, %v2664_v5 }
  0x18   :  { %2347 = vmatprep.subr.mxu1 %v2664_v5 }
  0x19   :  { %2348 = vmatpush3.msra.mxu1 %v2729_v7 }
  0x1a   :  { %2349 = vmatprep.subr.mxu1 %v2664_v5 }
  0x1b   :  { %2350 = vmatpush3.msra.mxu1 %v2743_v10 }
  0x1c   :  { %2351 = vmatprep.subr.mxu1 %v2664_v5 }
  0x1d   :  { %2352 = vmatpush3.msra.mxu1 %v2753_v11 }
  0x1e   :  { %2367 = vmatprep.subr.mxu1 %v2664_v5 }
  0xc6   :  { %v2324_v16 = vpop.f32.mrf.mxu1 }
  0xc7   :  { %v140_v17 = vadd.f32 %v2324_v16, %v2107_v15 }
  0xc8   :  { %v134_v18 = vpop.f32.mrf.mxu1 }
  0xc9   :  { %v135_v32 = vadd.f32 %v2107_v15, %v134_v18 }
  0xca   :  { %v2327_v19 = vpop.f32.mrf.mxu1 }
  0xcb   :  { %v2794_v20 = vadd.f32 %v2327_v19, %v2107_v15 }
  0xcc   :  { %v144_v21 = vpop.f32.mrf.mxu1 }
  0xcd   :  { %v2796_v22 = vadd.f32 %v2107_v15, %v144_v21 }
  0xce   :  { %v2330_v24 = vpop.f32.mrf.mxu1 }
  0xcf   :  { %v2798_v25 = vadd.f32 %v2330_v24, %v2107_v15 }
  0xd0   :  { %v154_v26 = vpop.f32.mrf.mxu1 }
  0xd1   :  { %v2800_v27 = vadd.f32 %v2107_v15, %v154_v26 }
  0xd2   :  { %v2333_v29 = vpop.f32.mrf.mxu1 }
  0xd3   :  { %v2802_v30 = vadd.f32 %v2333_v29, %v2107_v15 }
  0xd4   :  { %v164_v31 = vpop.f32.mrf.mxu1 }
  0xd5   :  { %v2804_v33 = vadd.f32 %v2107_v15, %v164_v31 }
  0xd6   :  { %v247_v34 = vpop.f32.mrf.mxu1 }
  0xd7   :  { %v251_v35 = vadd.f32 %v247_v34, %v135_v32 }
  0xd8   :  { %v2344_v37 = vpop.f32.mrf.mxu1 }
  0xd9   :  { %v252_v38 = vadd.f32 %v251_v35, %v251_v35 }
  0xdb   :  { %v253_v39 = vsel %vm2806_vm4, %v252_v38, %v251_v35 }
  0xdc   :  { %v2116_v40 = vmul.f32 -1.442695, %v253_v39 }
  0xde   :  { %2546 = vpow2.f32 %v2116_v40 }
  0xeb   :  { %v2547_v41 = vpop.eup %2546 }
  0xec   :  { %v257_v42 = vadd.f32 1.0, %v2547_v41 }
  0xee   :  { %2548 = vrcp.f32 %v257_v42 }
  0xfb   :  { %v2549_v43 = vpop.eup %2548 }
  0xfc   :  { %v260_v44 = vadd.f32 %v2549_v43, %v2549_v43 }
  0xfe   :  { %v2117_v45 = vadd.f32 -1.0, %v260_v44 }
 0x100   :  { %v262_v46 = vsel %vm2806_vm4, %v2117_v45, %v2549_v43 }
 0x101   :  { %265 = vrot.lane.b32.xlu0 %v262_v46, %s2666_s21  ;;  %v263_v49 = vmul.f32 0.0, %v262_v46 }
 0x173   :  { %v266_v47 = vpop.permute.xlu0 %265 }
 0x174   :  { %v268_v48 = vmul.f32 %v266_v47, %v262_v46 }
 0x176   :  { %270 = vrot.lane.b32.xlu0 %v268_v48, %s2667_s22 }
 0x1e8   :  { %v271_v50 = vpop.permute.xlu0 %270 }
 0x1e9   :  { %v273_v51 = vadd.f32 %v271_v50, %v263_v49 }
 0x1eb   :  { %2550 = vtanh.f32 %v273_v51 }
 0x1f8   :  { %v2551_v52 = vpop.eup %2550 }
 0x1f9   :  { %276 = vrot.lane.b32.xlu1 %v2551_v52, %s2666_s21 }
 0x26b   :  { %v277_v53 = vpop.permute.xlu1 %276 }
 0x26c   :  { %v279_v54 = vmul.f32 %v277_v53, %v262_v46 }
 0x26e   :  { %281 = vrot.lane.b32.xlu1 %v279_v54, %s2667_s22 }
 0x2e0   :  { %v2818_v55 = vpop.permute.xlu1 %281 }
 0x2e1   :  { %2354 = vmatmul.mubr.msk.f32.vlgmr.msra.gmra.mxu1 %vm177_vm5, %v2818_v55 }
 0x2e2   :  { %2368 = vmatpush3.msra.mxu1 %v2716_v4  ;;  %2375 = vmatprep.mubr.msk.f32.mxu1 %vm2665_vm1, %v2664_v5 }
 0x2e3   :  { %2369 = vmatprep.subr.mxu1 %v2664_v5 }
 0x2e4   :  { %2370 = vmatpush3.msra.mxu1 %v2729_v7 }
 0x2e5   :  { %2371 = vmatprep.subr.mxu1 %v2664_v5 }
 0x2e6   :  { %2372 = vmatpush3.msra.mxu1 %v2743_v10 }
 0x2e7   :  { %2373 = vmatprep.subr.mxu1 %v2664_v5 }
 0x2e8   :  { %2374 = vmatpush3.msra.mxu1 %v2753_v11 }
 0x2e9   :  { %2389 = vmatprep.subr.mxu1 %v2664_v5 }
 0x3a1   :  { %v351_v56 = vpop.f32.mrf.mxu1 }
 0x3a2   :  { %v355_v57 = vadd.f32 %v351_v56, %v140_v17 }
 0x3a3   :  { %v2355_v58 = vpop.f32.mrf.mxu1 }
 0x3a4   :  { %v356_v59 = vadd.f32 %v355_v57, %v355_v57 }
 0x3a6   :  { %v357_v60 = vsel %vm2806_vm4, %v356_v59, %v355_v57 }
 0x3a7   :  { %v2119_v61 = vmul.f32 -1.442695, %v357_v60 }
 0x3a9   :  { %2552 = vpow2.f32 %v2119_v61 }
 0x3b6   :  { %v2553_v62 = vpop.eup %2552 }
 0x3b7   :  { %v361_v63 = vadd.f32 1.0, %v2553_v62 }
 0x3b9   :  { %2554 = vrcp.f32 %v361_v63 }
 0x3c6   :  { %v2555_v0 = vpop.eup %2554 }
 0x3c7   :  { %v364_v1 = vadd.f32 %v2555_v0, %v2555_v0 }
 0x3c9   :  { %v2120_v2 = vadd.f32 -1.0, %v364_v1 }
 0x3cb   :  { %v366_v3 = vsel %vm2806_vm4, %v2120_v2, %v2555_v0 }
 0x3cc   :  { %369 = vrot.lane.b32.xlu0 %v366_v3, %s2666_s21  ;;  %v367_v9 = vmul.f32 %v366_v3, %v273_v51 }
 0x43e   :  { %v370_v6 = vpop.permute.xlu0 %369 }
 0x43f   :  { %v372_v8 = vmul.f32 %v370_v6, %v366_v3 }
 0x441   :  { %374 = vrot.lane.b32.xlu1 %v372_v8, %s2667_s22 }
 0x4b3   :  { %v375_v12 = vpop.permute.xlu1 %374 }
 0x4b4   :  { %v377_v13 = vadd.f32 %v375_v12, %v367_v9 }
 0x4b6   :  { %2556 = vtanh.f32 %v377_v13 }
 0x4c3   :  { %v2557_v14 = vpop.eup %2556 }
 0x4c4   :  { %380 = vrot.lane.b32.xlu0 %v2557_v14, %s2666_s21 }
 0x536   :  { %v381_v15 = vpop.permute.xlu0 %380 }
 0x537   :  { %v383_v16 = vmul.f32 %v381_v15, %v366_v3 }
 0x539   :  { %385 = vrot.lane.b32.xlu1 %v383_v16, %s2667_s22 }
 0x5ab   :  { %v2840_v17 = vpop.permute.xlu1 %385 }
 0x5ac   :  { %2365 = vmatmul.mubr.msk.f32.vlgmr.msra.gmra.mxu0 %vm177_vm5, %v2840_v17 }
 0x5ad   :  { %2379 = vmatpush3.msra.mxu0 %v2716_v4  ;;  %2386 = vmatprep.mubr.msk.f32.mxu0 %vm2665_vm1, %v2664_v5 }
 0x5ae   :  { %2380 = vmatprep.subr.mxu0 %v2664_v5 }
 0x5af   :  { %2381 = vmatpush3.msra.mxu0 %v2729_v7 }
 0x5b0   :  { %2382 = vmatprep.subr.mxu0 %v2664_v5 }
 0x5b1   :  { %2383 = vmatpush3.msra.mxu0 %v2743_v10 }
 0x5b2   :  { %2384 = vmatprep.subr.mxu0 %v2664_v5 }
 0x5b3   :  { %2385 = vmatpush3.msra.mxu0 %v2753_v11 }
 0x5b4   :  { %2400 = vmatprep.subr.mxu0 %v2664_v5 }
 0x66c   :  { %v455_v18 = vpop.f32.mrf.mxu0 }
 0x66d   :  { %v459_v19 = vadd.f32 %v455_v18, %v2796_v22 }
 0x66e   :  { %v2366_v21 = vpop.f32.mrf.mxu0 }
 0x66f   :  { %v460_v23 = vadd.f32 %v459_v19, %v459_v19 }
 0x671   :  { %v461_v24 = vsel %vm2806_vm4, %v460_v23, %v459_v19 }
 0x672   :  { %v2122_v26 = vmul.f32 -1.442695, %v461_v24 }
 0x674   :  { %2558 = vpow2.f32 %v2122_v26 }
 0x681   :  { %v2559_v28 = vpop.eup %2558 }
 0x682   :  { %v465_v29 = vadd.f32 1.0, %v2559_v28 }
 0x684   :  { %2560 = vrcp.f32 %v465_v29 }
 0x691   :  { %v2561_v31 = vpop.eup %2560 }
 0x692   :  { %v468_v32 = vadd.f32 %v2561_v31, %v2561_v31 }
 0x694   :  { %v2123_v34 = vadd.f32 -1.0, %v468_v32 }
 0x696   :  { %v470_v35 = vsel %vm2806_vm4, %v2123_v34, %v2561_v31 }
 0x697   :  { %473 = vrot.lane.b32.xlu0 %v470_v35, %s2666_s21  ;;  %v471_v38 = vmul.f32 %v470_v35, %v377_v13 }
 0x709   :  { %v474_v37 = vpop.permute.xlu0 %473 }
 0x70a   :  { %v476_v22 = vmul.f32 %v474_v37, %v470_v35 }
 0x70c   :  { %478 = vrot.lane.b32.xlu1 %v476_v22, %s2667_s22 }
 0x77e   :  { %v479_v39 = vpop.permute.xlu1 %478 }
 0x77f   :  { %v481_v40 = vadd.f32 %v479_v39, %v471_v38 }
 0x781   :  { %2562 = vtanh.f32 %v481_v40 }
 0x78e   :  { %v2563_v41 = vpop.eup %2562 }
 0x78f   :  { %484 = vrot.lane.b32.xlu0 %v2563_v41, %s2666_s21 }
 0x801   :  { %v485_v42 = vpop.permute.xlu0 %484 }
 0x802   :  { %v487_v43 = vmul.f32 %v485_v42, %v470_v35 }
 0x804   :  { %489 = vrot.lane.b32.xlu1 %v487_v43, %s2667_s22 }
 0x876   :  { %v2863_v44 = vpop.permute.xlu1 %489 }
 0x877   :  { %2376 = vmatmul.mubr.msk.f32.vlgmr.msra.gmra.mxu1 %vm177_vm5, %v2863_v44 }
 0x878   :  { %2390 = vmatpush3.msra.mxu1 %v2716_v4  ;;  %2397 = vmatprep.mubr.msk.f32.mxu1 %vm2665_vm1, %v2664_v5 }
 0x879   :  { %2391 = vmatprep.subr.mxu1 %v2664_v5 }
 0x87a   :  { %2392 = vmatpush3.msra.mxu1 %v2729_v7 }
 0x87b   :  { %2393 = vmatprep.subr.mxu1 %v2664_v5 }
 0x87c   :  { %2394 = vmatpush3.msra.mxu1 %v2743_v10 }
 0x87d   :  { %2395 = vmatprep.subr.mxu1 %v2664_v5 }
 0x87e   :  { %2396 = vmatpush3.msra.mxu1 %v2753_v11 }
 0x87f   :  { %2411 = vmatprep.subr.mxu1 %v2664_v5 }
 0x937   :  { %v559_v45 = vpop.f32.mrf.mxu1 }
 0x938   :  { %v563_v46 = vadd.f32 %v559_v45, %v2794_v20 }
 0x939   :  { %v2377_v47 = vpop.f32.mrf.mxu1 }
 0x93a   :  { %v564_v48 = vadd.f32 %v563_v46, %v563_v46  ;;  %v2142_v47 = vld [vmem:[%s3318_s2 + $0x38] sm:$0xff] }
 0x93c   :  { %v565_v49 = vsel %vm2806_vm4, %v564_v48, %v563_v46 }
 0x93d   :  { %v2125_v50 = vmul.f32 -1.442695, %v565_v49 }
 0x93f   :  { %2564 = vpow2.f32 %v2125_v50 }
 0x94c   :  { %v2565_v51 = vpop.eup %2564 }
 0x94d   :  { %v569_v52 = vadd.f32 1.0, %v2565_v51 }
 0x94f   :  { %2566 = vrcp.f32 %v569_v52  ;;  %v2141_v52 = vld [vmem:[%s3318_s2 + $0x30] sm:$0xff] }
 0x95c   :  { %v2567_v53 = vpop.eup %2566 }
 0x95d   :  { %v572_v54 = vadd.f32 %v2567_v53, %v2567_v53 }
 0x95f   :  { %v2126_v56 = vadd.f32 -1.0, %v572_v54  ;;  %v2139_v54 = vld [vmem:[%s3318_s2 + $0x20] sm:$0xff] }
 0x961   :  { %v574_v57 = vsel %vm2806_vm4, %v2126_v56, %v2567_v53  ;;  %v2140_v53 = vld [vmem:[%s3318_s2 + $0x28] sm:$0xff] }
 0x962   :  { %577 = vrot.lane.b32.xlu0 %v574_v57, %s2666_s21  ;;  %v575_v59 = vmul.f32 %v574_v57, %v481_v40 }
 0x9d4   :  { %v578_v58 = vpop.permute.xlu0 %577 }
 0x9d5   :  { %v580_v20 = vmul.f32 %v578_v58, %v574_v57 }
 0x9d7   :  { %582 = vrot.lane.b32.xlu1 %v580_v20, %s2667_s22 }
 0xa49   :  { %v583_v60 = vpop.permute.xlu1 %582 }
 0xa4a   :  { %v585_v61 = vadd.f32 %v583_v60, %v575_v59 }
 0xa4c   :  { %2568 = vtanh.f32 %v585_v61 }
 0xa59   :  { %v2569_v62 = vpop.eup %2568 }
 0xa5a   :  { %588 = vrot.lane.b32.xlu0 %v2569_v62, %s2666_s21 }
 0xacc   :  { %v589_v63 = vpop.permute.xlu0 %588 }
 0xacd   :  { %v591_v0 = vmul.f32 %v589_v63, %v574_v57 }
 0xacf   :  { %593 = vrot.lane.b32.xlu1 %v591_v0, %s2667_s22 }
 0xb41   :  { %v2886_v1 = vpop.permute.xlu1 %593 }
 0xb42   :  { %2387 = vmatmul.mubr.msk.f32.vlgmr.msra.gmra.mxu0 %vm177_vm5, %v2886_v1 }
 0xb43   :  { %2401 = vmatpush3.msra.mxu0 %v2716_v4  ;;  %2408 = vmatprep.mubr.msk.f32.mxu0 %vm2665_vm1, %v2664_v5 }
 0xb44   :  { %2402 = vmatprep.subr.mxu0 %v2664_v5 }
 0xb45   :  { %2403 = vmatpush3.msra.mxu0 %v2729_v7 }
 0xb46   :  { %2404 = vmatprep.subr.mxu0 %v2664_v5 }
 0xb47   :  { %2405 = vmatpush3.msra.mxu0 %v2743_v10 }
 0xb48   :  { %2406 = vmatprep.subr.mxu0 %v2664_v5 }
 0xb49   :  { %2407 = vmatpush3.msra.mxu0 %v2753_v11 }
 0xb4a   :  { %2422 = vmatprep.subr.mxu0 %v2142_v47 }
 0xc02   :  { %v663_v2 = vpop.f32.mrf.mxu0 }
 0xc03   :  { %v667_v3 = vadd.f32 %v663_v2, %v2800_v27 }
 0xc04   :  { %v2388_v6 = vpop.f32.mrf.mxu0 }
 0xc05   :  { %v668_v8 = vadd.f32 %v667_v3, %v667_v3 }
 0xc07   :  { %v669_v9 = vsel %vm2806_vm4, %v668_v8, %v667_v3  ;;  %v2966_v8 = vld [vmem:[%s3318_s2 + $0x58] sm:$0xff] }
 0xc08   :  { %v2128_v12 = vmul.f32 -1.442695, %v669_v9  ;;  %v2972_v9 = vld [vmem:[%s3318_s2 + $0x50] sm:$0xff] }
 0xc0a   :  { %2570 = vpow2.f32 %v2128_v12  ;;  %v2979_v12 = vld [vmem:[%s3318_s2 + $0x48] sm:$0xff] }
 0xc17   :  { %v2571_v13 = vpop.eup %2570 }
 0xc18   :  { %v673_v14 = vadd.f32 1.0, %v2571_v13  ;;  %v2986_v13 = vld [vmem:[%s3318_s2 + $0x40] sm:$0xff] }
 0xc1a   :  { %2572 = vrcp.f32 %v673_v14 }
 0xc27   :  { %v2573_v15 = vpop.eup %2572 }
 0xc28   :  { %v676_v16 = vadd.f32 %v2573_v15, %v2573_v15 }
 0xc2a   :  { %v2129_v18 = vadd.f32 -1.0, %v676_v16 }
 0xc2c   :  { %v678_v19 = vsel %vm2806_vm4, %v2129_v18, %v2573_v15 }
 0xc2d   :  { %681 = vrot.lane.b32.xlu0 %v678_v19, %s2666_s21  ;;  %v679_v23 = vmul.f32 %v678_v19, %v585_v61 }
 0xc9f   :  { %v682_v21 = vpop.permute.xlu0 %681 }
 0xca0   :  { %v684_v27 = vmul.f32 %v682_v21, %v678_v19 }
 0xca2   :  { %686 = vrot.lane.b32.xlu1 %v684_v27, %s2667_s22 }
 0xd14   :  { %v687_v24 = vpop.permute.xlu1 %686 }
 0xd15   :  { %v689_v26 = vadd.f32 %v687_v24, %v679_v23  ;;  %v3021_v24 = vld [vmem:[%s3319_s3 + $0x1] ss:$0 sm:$0xff] }
 0xd17   :  { %2574 = vtanh.f32 %v689_v26 }
 0xd24   :  { %v2575_v28 = vpop.eup %2574 }
 0xd25   :  { %692 = vrot.lane.b32.xlu0 %v2575_v28, %s2666_s21 }
 0xd97   :  { %v693_v29 = vpop.permute.xlu0 %692 }
 0xd98   :  { %v695_v31 = vmul.f32 %v693_v29, %v678_v19 }
 0xd9a   :  { %697 = vrot.lane.b32.xlu1 %v695_v31, %s2667_s22 }
 0xe0c   :  { %v698_v32 = vpop.permute.xlu1 %697 }
 0xe0d   :  { %2398 = vmatmul.mubr.msk.f32.vlgmr.msra.gmra.mxu1 %vm177_vm5, %v698_v32 }
 0xe0e   :  { %2412 = vmatpush3.msra.mxu1 %v2716_v4  ;;  %2419 = vmatprep.mubr.msk.f32.mxu1 %vm2665_vm1, %v2664_v5 }
 0xe0f   :  { %2413 = vmatprep.subr.mxu1 %v2664_v5 }
 0xe10   :  { %2414 = vmatpush3.msra.mxu1 %v2729_v7 }
 0xe11   :  { %2415 = vmatprep.subr.mxu1 %v2664_v5 }
 0xe12   :  { %2416 = vmatpush3.msra.mxu1 %v2743_v10 }
 0xe13   :  { %2417 = vmatprep.subr.mxu1 %v2664_v5 }
 0xe14   :  { %2418 = vmatpush3.msra.mxu1 %v2753_v11 }
 0xe15   :  { %2442 = vmatprep.subr.mxu1 %v2664_v5 }
 0xecd   :  { %v767_v34 = vpop.f32.mrf.mxu1 }
 0xece   :  { %v771_v4 = vadd.f32 %v767_v34, %v2798_v25 }
 0xecf   :  { %v2399_v35 = vpop.f32.mrf.mxu1 }
 0xed0   :  { %v772_v37 = vadd.f32 %v771_v4, %v771_v4 }
 0xed2   :  { %v773_v22 = vsel %vm2806_vm4, %v772_v37, %v771_v4 }
 0xed3   :  { %v2131_v38 = vmul.f32 -1.442695, %v773_v22 }
 0xed5   :  { %2576 = vpow2.f32 %v2131_v38 }
 0xee2   :  { %v2577_v7 = vpop.eup %2576 }
 0xee3   :  { %v777_v39 = vadd.f32 1.0, %v2577_v7 }
 0xee5   :  { %2578 = vrcp.f32 %v777_v39 }
 0xef2   :  { %v2579_v10 = vpop.eup %2578 }
 0xef3   :  { %v780_v40 = vadd.f32 %v2579_v10, %v2579_v10 }
 0xef5   :  { %v2132_v41 = vadd.f32 -1.0, %v780_v40 }
 0xef7   :  { %v782_v11 = vsel %vm2806_vm4, %v2132_v41, %v2579_v10 }
 0xef8   :  { %785 = vrot.lane.b32.xlu0 %v782_v11, %s2666_s21  ;;  %v783_v43 = vmul.f32 %v782_v11, %v689_v26 }
 0xf6a   :  { %v786_v42 = vpop.permute.xlu0 %785 }
 0xf6b   :  { %v788_v25 = vmul.f32 %v786_v42, %v782_v11 }
 0xf6d   :  { %790 = vrot.lane.b32.xlu1 %v788_v25, %s2667_s22 }
 0xfdf   :  { %v791_v45 = vpop.permute.xlu1 %790 }
 0xfe0   :  { %v793_v46 = vadd.f32 %v791_v45, %v783_v43 }
 0xfe2   :  { %2580 = vtanh.f32 %v793_v46 }
 0xfef   :  { %v2581_v48 = vpop.eup %2580 }
 0xff0   :  { %796 = vrot.lane.b32.xlu0 %v2581_v48, %s2666_s21 }
0x1062   :  { %v797_v49 = vpop.permute.xlu0 %796 }
0x1063   :  { %v799_v50 = vmul.f32 %v797_v49, %v782_v11 }
0x1065   :  { %801 = vrot.lane.b32.xlu1 %v799_v50, %s2667_s22 }
0x10d7   :  { %v802_v51 = vpop.permute.xlu1 %801 }
0x10d8   :  { %2409 = vmatmul.mubr.msk.f32.vlgmr.msra.gmra.mxu0 %vm177_vm5, %v802_v51 }
0x10d9   :  { %2423 = vmatpush3.msra.mxu0 %v2142_v47  ;;  %2430 = vmatprep.mubr.msk.f32.mxu0 %vm177_vm5, %v2818_v55 }
0x10da   :  { %2424 = vmatprep.subr.mxu0 %v2141_v52 }
0x10db   :  { %2425 = vmatpush3.msra.mxu0 %v2141_v52 }
0x10dc   :  { %2426 = vmatprep.subr.mxu0 %v2140_v53 }
0x10dd   :  { %2427 = vmatpush3.msra.mxu0 %v2140_v53 }
0x10de   :  { %2428 = vmatprep.subr.mxu0 %v2139_v54 }
0x10df   :  { %2429 = vmatpush3.msra.mxu0 %v2139_v54 }
0x10e0   :  { %2431 = vmatmul.mubr.msk.f32.vlgmr.msra.gmra.mxu0 %vm177_vm5, %v2840_v17  ;;  %2464 = vmatprep.subr.mxu0 %v2664_v5 }
0x10e1   :  { %2433 = vmatprep.mubr.msk.f32.mxu0 %vm177_vm5, %v2863_v44  ;;  %2465 = vmatpush3.msra.mxu0 %v2966_v8 }
0x10e2   :  { %2466 = vmatprep.subr.mxu0 %v2664_v5 }
0x10e3   :  { %2467 = vmatpush3.msra.mxu0 %v2972_v9 }
0x10e4   :  { %2434 = vmatmul.mubr.msk.f32.gmra.mxu0 %vm177_vm5, %v2886_v1  ;;  %2468 = vmatprep.subr.mxu0 %v2664_v5 }
0x10e5   :  { %2436 = vmatprep.mubr.msk.f32.mxu0 %vm177_vm5, %v698_v32  ;;  %2469 = vmatpush3.msra.mxu0 %v2979_v12 }
0x10e6   :  { %2470 = vmatprep.subr.mxu0 %v2664_v5 }
0x10e7   :  { %2471 = vmatpush3.msra.mxu0 %v2986_v13 }
0x10e8   :  { %2437 = vmatmul.mubr.msk.f32.gmra.mxu0 %vm177_vm5, %v802_v51  ;;  %2486 = vmatprep.subr.mxu0 %v2664_v5 }
0x1198   :  { %v871_v55 = vpop.f32.mrf.mxu0 }
0x1199   :  { %v875_v56 = vadd.f32 %v871_v55, %v2804_v33 }
0x119a   :  { %v2410_v57 = vpop.f32.mrf.mxu0 }
0x119b   :  { %v876_v58 = vadd.f32 %v875_v56, %v875_v56 }
0x119d   :  { %v877_v17 = vsel %vm2806_vm4, %v876_v58, %v875_v56 }
0x119e   :  { %v2134_v20 = vmul.f32 -1.442695, %v877_v17 }
0x11a0   :  { %2582 = vpow2.f32 %v2134_v20  ;;  %v3015_v18 = vpop.f32.mrf.mxu0 }
0x11a2   :  { %v1092_v23 = vpop.f32.mrf.mxu0 }
0x11a3   :  { %v1093_v26 = vadd.f32 %v3021_v24, %v1092_v23 }
0x11ad   :  { %v2583_v59 = vpop.eup %2582 }
0x11ae   :  { %v881_v60 = vadd.f32 1.0, %v2583_v59 }
0x11b0   :  { %2584 = vrcp.f32 %v881_v60 }
0x11bd   :  { %v2585_v44 = vpop.eup %2584 }
0x11be   :  { %v884_v61 = vadd.f32 %v2585_v44, %v2585_v44 }
0x11c0   :  { %v2135_v62 = vadd.f32 -1.0, %v884_v61 }
0x11c2   :  { %v886_v63 = vsel %vm2806_vm4, %v2135_v62, %v2585_v44  ;;  %v1098_v44 = vadd.f32 %v3015_v18, %v3021_v24 }
0x11c3   :  { %889 = vrot.lane.b32.xlu0 %v886_v63, %s2666_s21  ;;  %v887_v1 = vmul.f32 %v886_v63, %v793_v46 }
0x1235   :  { %v890_v0 = vpop.permute.xlu0 %889 }
0x1236   :  { %v892_v33 = vmul.f32 %v890_v0, %v886_v63 }
0x1238   :  { %894 = vrot.lane.b32.xlu1 %v892_v33, %s2667_s22 }
0x12aa   :  { %v895_v2 = vpop.permute.xlu1 %894 }
0x12ab   :  { %v2959_v3 = vadd.f32 %v895_v2, %v887_v1 }
0x12ad   :  { %2586 = vtanh.f32 %v2959_v3 }
0x12ba   :  { %v2587_v6 = vpop.eup %2586 }
0x12bb   :  { %900 = vrot.lane.b32.xlu0 %v2587_v6, %s2666_s21 }
0x132d   :  { %v901_v14 = vpop.permute.xlu0 %900 }
0x132e   :  { %v903_v15 = vmul.f32 %v901_v14, %v886_v63 }
0x1330   :  { %905 = vrot.lane.b32.xlu1 %v903_v15, %s2667_s22 }
0x13a2   :  { %v906_v16 = vpop.permute.xlu1 %905 }
0x13a3   :  { %2420 = vmatmul.mubr.msk.f32.vlgmr.msra.gmra.mxu1 %vm177_vm5, %v906_v16  ;;  %2439 = vmatprep.mubr.msk.f32.mxu0 %vm177_vm5, %v906_v16 }
0x13a4   :  { %2443 = vmatpush3.msra.mxu1 %v2966_v8  ;;  %2450 = vmatprep.mubr.msk.f32.mxu1 %vm2665_vm1, %v2664_v5 }
0x13a5   :  { %2444 = vmatprep.subr.mxu1 %v2664_v5 }
0x13a6   :  { %2445 = vmatpush3.msra.mxu1 %v2972_v9 }
0x13a7   :  { %2446 = vmatprep.subr.mxu1 %v2664_v5 }
0x13a8   :  { %2447 = vmatpush3.msra.mxu1 %v2979_v12 }
0x13a9   :  { %2448 = vmatprep.subr.mxu1 %v2664_v5 }
0x13aa   :  { %2449 = vmatpush3.msra.mxu1 %v2986_v13 }
0x13ab   :  { %2451 = vmatmul.mubr.f32.vlgmr.msra.gmra.mxu1 %v2664_v5  ;;  %2453 = vmatprep.subr.mxu1 %v2664_v5 }
0x13ac   :  { %2454 = vmatpush3.msra.mxu1 %v2966_v8  ;;  %2461 = vmatprep.mubr.msk.f32.mxu1 %vm2665_vm1, %v2664_v5 }
0x13ad   :  { %2455 = vmatprep.subr.mxu1 %v2664_v5 }
0x13ae   :  { %2456 = vmatpush3.msra.mxu1 %v2972_v9 }
0x13af   :  { %2457 = vmatprep.subr.mxu1 %v2664_v5 }
0x13b0   :  { %2458 = vmatpush3.msra.mxu1 %v2979_v12 }
0x13b1   :  { %2459 = vmatprep.subr.mxu1 %v2664_v5 }
0x13b2   :  { %2460 = vmatpush3.msra.mxu1 %v2986_v13 }
0x13b3   :  { %2475 = vmatprep.subr.mxu1 %v2664_v5 }
0x1463   :  { %v975_v19 = vpop.f32.mrf.mxu1 }
0x1464   :  { %v979_v21 = vadd.f32 %v975_v19, %v2802_v30 }
0x1465   :  { %v2421_v27 = vpop.f32.mrf.mxu1 }
0x1466   :  { %v980_v40 = vadd.f32 %v979_v21, %v979_v21 }
0x1468   :  { %v981_v41 = vsel %vm2806_vm4, %v980_v40, %v979_v21 }
0x1469   :  { %v2137_v11 = vmul.f32 -1.442695, %v981_v41 }
0x146b   :  { %v1202_v28 = vpop.f32.mrf.mxu1 }
0x146c   :  { %v1206_v29 = vadd.f32 %v1202_v28, %v1093_v26 }
0x146d   :  { %v2452_v31 = vpop.f32.mrf.mxu1 }
0x146e   :  { %v1207_v32 = vadd.f32 %v1206_v29, %v1206_v29 }
0x1470   :  { %v1208_v34 = vsel %vm2806_vm4, %v1207_v32, %v1206_v29 }
0x1471   :  { %v2157_v4 = vmul.f32 -1.442695, %v1208_v34  ;;  %v2435_v34 = vpop.f32.mrf.mxu0 }
0x1473   :  { %2588 = vpow2.f32 %v2157_v4  ;;  %v1102_v4 = vpop.f32.mrf.mxu0 }
0x1480   :  { %v2589_v35 = vpop.eup %2588 }
0x1481   :  { %v1212_v30 = vadd.f32 1.0, %v2589_v35  ;;  %v3082_v35 = vpop.f32.mrf.mxu0 }
0x1483   :  { %2590 = vrcp.f32 %v1212_v30  ;;  %v3084_v30 = vpop.f32.mrf.mxu0 }
0x1484   :  { %2592 = vpow2.f32 %v2137_v11 }
0x1490   :  { %v2591_v37 = vpop.eup %2590 }
0x1491   :  { %v1215_v22 = vadd.f32 %v2591_v37, %v2591_v37  ;;  %v2593_v42 = vpop.eup %2592 }
0x1492   :  { %v985_v25 = vadd.f32 1.0, %v2593_v42 }
0x1493   :  { %v2158_v38 = vadd.f32 -1.0, %v1215_v22 }
0x1494   :  { %2594 = vrcp.f32 %v985_v25 }
0x1495   :  { %v1217_v7 = vsel %vm2806_vm4, %v2158_v38, %v2591_v37  ;;  %v1103_v38 = vadd.f32 %v3021_v24, %v1102_v4 }
0x1496   :  { %1220 = vrot.lane.b32.xlu0 %v1217_v7, %s2666_s21  ;;  %v1218_v43 = vmul.f32 0.0, %v1217_v7 }
0x14a1   :  { %v2595_v47 = vpop.eup %2594 }
0x14a2   :  { %v988_v48 = vadd.f32 %v2595_v47, %v2595_v47 }
0x14a4   :  { %v2138_v50 = vadd.f32 -1.0, %v988_v48 }
0x14a6   :  { %v990_v51 = vsel %vm2806_vm4, %v2138_v50, %v2595_v47 }
0x14a7   :  { %v991_v57 = vmul.f32 %v990_v51, %v2959_v3 }
0x1508   :  { %v1221_v39 = vpop.permute.xlu0 %1220 }
0x1509   :  { %v1223_v10 = vmul.f32 %v1221_v39, %v1217_v7 }
0x150b   :  { %1225 = vrot.lane.b32.xlu1 %v1223_v10, %s2667_s22 }
0x157d   :  { %v1226_v45 = vpop.permute.xlu1 %1225 }
0x157e   :  { %v1228_v46 = vadd.f32 %v1226_v45, %v1218_v43 }
0x1580   :  { %2596 = vtanh.f32 %v1228_v46 }
0x158d   :  { %v2597_v49 = vpop.eup %2596 }
0x158e   :  { %1231 = vrot.lane.b32.xlu0 %v2597_v49, %s2666_s21 }
0x1592   :  { %993 = vrot.lane.b32.xlu0 %v990_v51, %s2666_s21 }
0x1600   :  { %v1232_v52 = vpop.permute.xlu0 %1231 }
0x1601   :  { %v1234_v53 = vmul.f32 %v1232_v52, %v1217_v7 }
0x1603   :  { %1236 = vrot.lane.b32.xlu1 %v1234_v53, %s2667_s22 }
0x1604   :  { %v994_v54 = vpop.permute.xlu0 %993 }
0x1605   :  { %v996_v55 = vmul.f32 %v994_v54, %v990_v51 }
0x1607   :  { %998 = vrot.lane.b32.xlu0 %v996_v55, %s2667_s22 }
0x1675   :  { %v3038_v56 = vpop.permute.xlu1 %1236 }
0x1676   :  { %2462 = vmatmul.mubr.msk.f32.vlgmr.msra.gmra.mxu1 %vm177_vm5, %v3038_v56 }
0x1677   :  { %2476 = vmatpush3.msra.mxu1 %v2966_v8  ;;  %2483 = vmatprep.mubr.msk.f32.mxu1 %vm2665_vm1, %v2664_v5 }
0x1678   :  { %2477 = vmatprep.subr.mxu1 %v2664_v5 }
0x1679   :  { %v999_v58 = vpop.permute.xlu0 %998  ;;  %2478 = vmatpush3.msra.mxu1 %v2972_v9 }
0x167a   :  { %v1001_v17 = vadd.f32 %v999_v58, %v991_v57  ;;  %2479 = vmatprep.subr.mxu1 %v2664_v5  ;;  %v1108_v58 = vadd.f32 %v2435_v34, %v3021_v24 }
0x167b   :  { %2480 = vmatpush3.msra.mxu1 %v2979_v12 }
0x167c   :  { %2598 = vtanh.f32 %v1001_v17  ;;  %2481 = vmatprep.subr.mxu1 %v2664_v5 }
0x167d   :  { %2482 = vmatpush3.msra.mxu1 %v2986_v13 }
0x167e   :  { %2497 = vmatprep.subr.mxu1 %v2664_v5 }
0x1689   :  { %v2599_v20 = vpop.eup %2598 }
0x168a   :  { %1004 = vrot.lane.b32.xlu0 %v2599_v20, %s2666_s21 }
0x16fc   :  { %v1005_v59 = vpop.permute.xlu0 %1004 }
0x16fd   :  { %v1007_v60 = vmul.f32 %v1005_v59, %v990_v51 }
0x16ff   :  { %1022 = vrot.lane.b32.xlu0 %v1007_v60, %s2667_s22 }
0x1736   :  { %v1306_v61 = vpop.f32.mrf.mxu1 }
0x1737   :  { %v1310_v62 = vadd.f32 %v1306_v61, %v1098_v44 }
0x1738   :  { %v2463_v63 = vpop.f32.mrf.mxu1 }
0x1739   :  { %v1311_v0 = vadd.f32 %v1310_v62, %v1310_v62 }
0x173b   :  { %v1312_v33 = vsel %vm2806_vm4, %v1311_v0, %v1310_v62 }
0x173c   :  { %v2160_v1 = vmul.f32 -1.442695, %v1312_v33 }
0x173e   :  { %2600 = vpow2.f32 %v2160_v1 }
0x174b   :  { %v2601_v2 = vpop.eup %2600 }
0x174c   :  { %v1316_v3 = vadd.f32 1.0, %v2601_v2 }
0x174e   :  { %2602 = vrcp.f32 %v1316_v3 }
0x175b   :  { %v2603_v6 = vpop.eup %2602 }
0x175c   :  { %v1319_v14 = vadd.f32 %v2603_v6, %v2603_v6 }
0x175e   :  { %v2161_v15 = vadd.f32 -1.0, %v1319_v14 }
0x1760   :  { %v1321_v16 = vsel %vm2806_vm4, %v2161_v15, %v2603_v6 }
0x1761   :  { %1324 = vrot.lane.b32.xlu1 %v1321_v16, %s2666_s21  ;;  %v1322_v27 = vmul.f32 %v1321_v16, %v1228_v46 }
0x1771   :  { %v1023_v18 = vpop.permute.xlu0 %1022 }
0x1772   :  { %2440 = vmatmul.mubr.msk.f32.gmra.mxu0 %vm177_vm5, %v1023_v18 }
0x1773   :  { %2472 = vmatprep.mubr.msk.f32.mxu0 %vm2665_vm1, %v2664_v5 }
0x17d3   :  { %v1325_v19 = vpop.permute.xlu1 %1324 }
0x17d4   :  { %v1327_v21 = vmul.f32 %v1325_v19, %v1321_v16 }
0x17d6   :  { %1329 = vrot.lane.b32.xlu1 %v1327_v21, %s2667_s22 }
0x1832   :  { %v3086_v37 = vpop.f32.mrf.mxu0 }
0x1834   :  { %v3088_v22 = vpop.f32.mrf.mxu0 }
0x1848   :  { %v1330_v23 = vpop.permute.xlu1 %1329 }
0x1849   :  { %v1332_v26 = vadd.f32 %v1330_v23, %v1322_v27  ;;  %v1113_v23 = vadd.f32 %v3021_v24, %v3084_v30 }
0x184b   :  { %2604 = vtanh.f32 %v1332_v26 }
0x1858   :  { %v2605_v28 = vpop.eup %2604 }
0x1859   :  { %1335 = vrot.lane.b32.xlu1 %v2605_v28, %s2666_s21 }
0x18cb   :  { %v1336_v29 = vpop.permute.xlu1 %1335 }
0x18cc   :  { %v3067_v31 = vmul.f32 %v1336_v29, %v1321_v16 }
0x18ce   :  { %1340 = vrot.lane.b32.xlu1 %v3067_v31, %s2667_s22 }
0x1940   :  { %v1341_v32 = vpop.permute.xlu1 %1340 }
0x1941   :  { %2473 = vmatmul.mubr.msk.f32.vlgmr.msra.gmra.mxu0 %vm177_vm5, %v1341_v32 }
0x1942   :  { %2487 = vmatpush3.msra.mxu0 %v2966_v8  ;;  %2494 = vmatprep.mubr.msk.f32.mxu0 %vm2665_vm1, %v2664_v5 }
0x1943   :  { %2488 = vmatprep.subr.mxu0 %v2664_v5 }
0x1944   :  { %2489 = vmatpush3.msra.mxu0 %v2972_v9 }
0x1945   :  { %2490 = vmatprep.subr.mxu0 %v2664_v5 }
0x1946   :  { %2491 = vmatpush3.msra.mxu0 %v2979_v12 }
0x1947   :  { %2492 = vmatprep.subr.mxu0 %v2664_v5 }
0x1948   :  { %2493 = vmatpush3.msra.mxu0 %v2986_v13 }
0x1949   :  { %2508 = vmatprep.subr.mxu0 %v2664_v5 }
0x1a01   :  { %v1410_v7 = vpop.f32.mrf.mxu0 }
0x1a02   :  { %v1414_v39 = vadd.f32 %v1410_v7, %v1103_v38 }
0x1a03   :  { %v2474_v10 = vpop.f32.mrf.mxu0 }
0x1a04   :  { %v1415_v40 = vadd.f32 %v1414_v39, %v1414_v39 }
0x1a06   :  { %v1416_v41 = vsel %vm2806_vm4, %v1415_v40, %v1414_v39 }
0x1a07   :  { %v2163_v11 = vmul.f32 -1.442695, %v1416_v41 }
0x1a09   :  { %2606 = vpow2.f32 %v2163_v11 }
0x1a16   :  { %v2607_v42 = vpop.eup %2606 }
0x1a17   :  { %v1420_v25 = vadd.f32 1.0, %v2607_v42 }
0x1a19   :  { %2608 = vrcp.f32 %v1420_v25 }
0x1a26   :  { %v2609_v43 = vpop.eup %2608 }
0x1a27   :  { %v1423_v45 = vadd.f32 %v2609_v43, %v2609_v43 }
0x1a29   :  { %v2164_v46 = vadd.f32 -1.0, %v1423_v45 }
0x1a2b   :  { %v1425_v47 = vsel %vm2806_vm4, %v2164_v46, %v2609_v43 }
0x1a2c   :  { %1428 = vrot.lane.b32.xlu0 %v1425_v47, %s2666_s21  ;;  %v1426_v50 = vmul.f32 %v1425_v47, %v1332_v26 }
0x1a9e   :  { %v1429_v48 = vpop.permute.xlu0 %1428 }
0x1a9f   :  { %v1431_v49 = vmul.f32 %v1429_v48, %v1425_v47 }
0x1aa1   :  { %1433 = vrot.lane.b32.xlu1 %v1431_v49, %s2667_s22  ;;  %v1118_v49 = vadd.f32 %v3082_v35, %v3021_v24 }
0x1b13   :  { %v1434_v51 = vpop.permute.xlu1 %1433 }
0x1b14   :  { %v1436_v52 = vadd.f32 %v1434_v51, %v1426_v50 }
0x1b16   :  { %2610 = vtanh.f32 %v1436_v52 }
0x1b23   :  { %v2611_v53 = vpop.eup %2610 }
0x1b24   :  { %1439 = vrot.lane.b32.xlu0 %v2611_v53, %s2666_s21 }
0x1b96   :  { %v1440_v54 = vpop.permute.xlu0 %1439 }
0x1b97   :  { %v3098_v55 = vmul.f32 %v1440_v54, %v1425_v47 }
0x1b99   :  { %1444 = vrot.lane.b32.xlu1 %v3098_v55, %s2667_s22 }
0x1c0b   :  { %v1445_v57 = vpop.permute.xlu1 %1444 }
0x1c0c   :  { %2484 = vmatmul.mubr.msk.f32.vlgmr.msra.gmra.mxu1 %vm177_vm5, %v1445_v57 }
0x1c0d   :  { %2498 = vmatpush3.msra.mxu1 %v2966_v8  ;;  %2505 = vmatprep.mubr.msk.f32.mxu1 %vm2665_vm1, %v2664_v5 }
0x1c0e   :  { %2499 = vmatprep.subr.mxu1 %v2664_v5 }
0x1c0f   :  { %2500 = vmatpush3.msra.mxu1 %v2972_v9 }
0x1c10   :  { %2501 = vmatprep.subr.mxu1 %v2664_v5 }
0x1c11   :  { %2502 = vmatpush3.msra.mxu1 %v2979_v12 }
0x1c12   :  { %2503 = vmatprep.subr.mxu1 %v2664_v5 }
0x1c13   :  { %2504 = vmatpush3.msra.mxu1 %v2986_v13 }
0x1c14   :  { %2519 = vmatprep.subr.mxu1 %v2664_v5 }
0x1ccc   :  { %v1514_v17 = vpop.f32.mrf.mxu1 }
0x1ccd   :  { %v1518_v20 = vadd.f32 %v1514_v17, %v1108_v58 }
0x1cce   :  { %v2485_v59 = vpop.f32.mrf.mxu1 }
0x1ccf   :  { %v1519_v60 = vadd.f32 %v1518_v20, %v1518_v20 }
0x1cd1   :  { %v1520_v44 = vsel %vm2806_vm4, %v1519_v60, %v1518_v20 }
0x1cd2   :  { %v2166_v61 = vmul.f32 -1.442695, %v1520_v44 }
0x1cd4   :  { %2612 = vpow2.f32 %v2166_v61 }
0x1ce1   :  { %v2613_v62 = vpop.eup %2612 }
0x1ce2   :  { %v1524_v63 = vadd.f32 1.0, %v2613_v62 }
0x1ce4   :  { %2614 = vrcp.f32 %v1524_v63 }
0x1cf1   :  { %v2615_v0 = vpop.eup %2614 }
0x1cf2   :  { %v1527_v33 = vadd.f32 %v2615_v0, %v2615_v0 }
0x1cf4   :  { %v2167_v1 = vadd.f32 -1.0, %v1527_v33 }
0x1cf6   :  { %v1529_v2 = vsel %vm2806_vm4, %v2167_v1, %v2615_v0  ;;  %v1123_v0 = vadd.f32 %v3021_v24, %v3088_v22 }
0x1cf7   :  { %1532 = vrot.lane.b32.xlu0 %v1529_v2, %s2666_s21  ;;  %v1530_v14 = vmul.f32 %v1529_v2, %v1436_v52 }
0x1d69   :  { %v1533_v3 = vpop.permute.xlu0 %1532 }
0x1d6a   :  { %v1535_v6 = vmul.f32 %v1533_v3, %v1529_v2 }
0x1d6c   :  { %1537 = vrot.lane.b32.xlu1 %v1535_v6, %s2667_s22 }
0x1dde   :  { %v1538_v15 = vpop.permute.xlu1 %1537 }
0x1ddf   :  { %v1540_v16 = vadd.f32 %v1538_v15, %v1530_v14 }
0x1de1   :  { %2616 = vtanh.f32 %v1540_v16 }
0x1dee   :  { %v2617_v18 = vpop.eup %2616 }
0x1def   :  { %1543 = vrot.lane.b32.xlu0 %v2617_v18, %s2666_s21 }
0x1e61   :  { %v1544_v19 = vpop.permute.xlu0 %1543 }
0x1e62   :  { %v3121_v21 = vmul.f32 %v1544_v19, %v1529_v2 }
0x1e64   :  { %1548 = vrot.lane.b32.xlu1 %v3121_v21, %s2667_s22 }
0x1ed6   :  { %v1549_v27 = vpop.permute.xlu1 %1548 }
0x1ed7   :  { %2495 = vmatmul.mubr.msk.f32.vlgmr.msra.gmra.mxu0 %vm177_vm5, %v1549_v27 }
0x1ed8   :  { %2509 = vmatpush3.msra.mxu0 %v2966_v8  ;;  %2516 = vmatprep.mubr.msk.f32.mxu0 %vm2665_vm1, %v2664_v5 }
0x1ed9   :  { %2510 = vmatprep.subr.mxu0 %v2664_v5 }
0x1eda   :  { %2511 = vmatpush3.msra.mxu0 %v2972_v9 }
0x1edb   :  { %2512 = vmatprep.subr.mxu0 %v2664_v5 }
0x1edc   :  { %2513 = vmatpush3.msra.mxu0 %v2979_v12 }
0x1edd   :  { %2514 = vmatprep.subr.mxu0 %v2664_v5 }
0x1ede   :  { %2515 = vmatpush3.msra.mxu0 %v2986_v13 }
0x1f97   :  { %v1618_v26 = vpop.f32.mrf.mxu0 }
0x1f98   :  { %v1622_v28 = vadd.f32 %v1618_v26, %v1113_v23 }
0x1f99   :  { %v2496_v29 = vpop.f32.mrf.mxu0 }
0x1f9a   :  { %v1623_v32 = vadd.f32 %v1622_v28, %v1622_v28 }
0x1f9c   :  { %v1624_v34 = vsel %vm2806_vm4, %v1623_v32, %v1622_v28 }
0x1f9d   :  { %v2169_v4 = vmul.f32 -1.442695, %v1624_v34 }
0x1f9f   :  { %2618 = vpow2.f32 %v2169_v4 }
0x1fac   :  { %v2619_v38 = vpop.eup %2618 }
0x1fad   :  { %v1628_v7 = vadd.f32 1.0, %v2619_v38 }
0x1faf   :  { %2620 = vrcp.f32 %v1628_v7 }
0x1fbc   :  { %v2621_v39 = vpop.eup %2620 }
0x1fbd   :  { %v1631_v10 = vadd.f32 %v2621_v39, %v2621_v39 }
0x1fbf   :  { %v2170_v40 = vadd.f32 -1.0, %v1631_v10 }
0x1fc1   :  { %v1633_v41 = vsel %vm2806_vm4, %v2170_v40, %v2621_v39  ;;  %v1128_v39 = vadd.f32 %v3086_v37, %v3021_v24 }
0x1fc2   :  { %1636 = vrot.lane.b32.xlu0 %v1633_v41, %s2666_s21  ;;  %v1634_v42 = vmul.f32 %v1633_v41, %v1540_v16 }
0x2034   :  { %v1637_v30 = vpop.permute.xlu0 %1636 }
0x2035   :  { %v1639_v11 = vmul.f32 %v1637_v30, %v1633_v41 }
0x2037   :  { %1641 = vrot.lane.b32.xlu1 %v1639_v11, %s2667_s22 }
0x20a9   :  { %v1642_v25 = vpop.permute.xlu1 %1641 }
0x20aa   :  { %v1644_v43 = vadd.f32 %v1642_v25, %v1634_v42 }
0x20ac   :  { %2622 = vtanh.f32 %v1644_v43 }
0x20b9   :  { %v2623_v45 = vpop.eup %2622 }
0x20ba   :  { %1647 = vrot.lane.b32.xlu0 %v2623_v45, %s2666_s21 }
0x212c   :  { %v1648_v46 = vpop.permute.xlu0 %1647 }
0x212d   :  { %v1650_v47 = vmul.f32 %v1648_v46, %v1633_v41 }
0x212f   :  { %1652 = vrot.lane.b32.xlu1 %v1650_v47, %s2667_s22 }
0x21a1   :  { %v3145_v48 = vpop.permute.xlu1 %1652 }
0x21a2   :  { %2506 = vmatmul.mubr.msk.f32.vlgmr.msra.gmra.mxu1 %vm177_vm5, %v3145_v48 }
0x21a3   :  { %2520 = vmatpush3.msra.mxu1 %v2966_v8  ;;  %2527 = vmatprep.mubr.msk.f32.mxu1 %vm2665_vm1, %v2664_v5 }
0x21a4   :  { %2521 = vmatprep.subr.mxu1 %v2664_v5 }
0x21a5   :  { %2522 = vmatpush3.msra.mxu1 %v2972_v9 }
0x21a6   :  { %2523 = vmatprep.subr.mxu1 %v2664_v5 }
0x21a7   :  { %2524 = vmatpush3.msra.mxu1 %v2979_v12 }
0x21a8   :  { %2525 = vmatprep.subr.mxu1 %v2664_v5 }
0x21a9   :  { %2526 = vmatpush3.msra.mxu1 %v2986_v13 }
0x2262   :  { %v1722_v50 = vpop.f32.mrf.mxu1 }
0x2263   :  { %v1726_v8 = vadd.f32 %v1722_v50, %v1118_v49 }
0x2264   :  { %v2507_v51 = vpop.f32.mrf.mxu1 }
0x2265   :  { %v1727_v52 = vadd.f32 %v1726_v8, %v1726_v8  ;;  %v2015_v51 = vld [vmem:[%s3320_s4 + $0xf0] sm:$0xff] }
0x2267   :  { %v1728_v53 = vsel %vm2806_vm4, %v1727_v52, %v1726_v8  ;;  %v2016_v8 = vld [vmem:[%s3320_s4 + $0xf8] sm:$0xff]  ;;  %v1999_v52 = vld [vmem:[%s3320_s4 + $0x70] sm:$0xff] }
0x2268   :  { %v2172_v54 = vmul.f32 -1.442695, %v1728_v53  ;;  %2283 = vmatprep.subr.mxu0 %v2016_v8  ;;  %v1998_v53 = vld [vmem:[%s3320_s4 + $0x68] sm:$0xff] }
0x226a   :  { %2624 = vpow2.f32 %v2172_v54  ;;  %v2013_v54 = vld [vmem:[%s3320_s4 + $0xe0] sm:$0xff] }
0x2277   :  { %v2625_v9 = vpop.eup %2624 }
0x2278   :  { %v1732_v57 = vadd.f32 1.0, %v2625_v9  ;;  %v1997_v9 = vld [vmem:[%s3320_s4 + $0x60] sm:$0xff] }
0x227a   :  { %2626 = vrcp.f32 %v1732_v57  ;;  %v2012_v57 = vld [vmem:[%s3320_s4 + $0xd8] sm:$0xff] }
0x2287   :  { %v2627_v12 = vpop.eup %2626 }
0x2288   :  { %v1735_v58 = vadd.f32 %v2627_v12, %v2627_v12 }
0x228a   :  { %v2173_v5 = vadd.f32 -1.0, %v1735_v58  ;;  %v2011_v58 = vld [vmem:[%s3320_s4 + $0xd0] sm:$0xff] }
0x228c   :  { %v1737_v13 = vsel %vm2806_vm4, %v2173_v5, %v2627_v12  ;;  %v1996_v12 = vld [vmem:[%s3320_s4 + $0x58] sm:$0xff]  ;;  %v1995_v5 = vld [vmem:[%s3320_s4 + $0x50] sm:$0xff] }
0x228d   :  { %1740 = vrot.lane.b32.xlu0 %v1737_v13, %s2666_s21  ;;  %v1738_v20 = vmul.f32 %v1737_v13, %v1644_v43 }
0x22ff   :  { %v1741_v35 = vpop.permute.xlu0 %1740 }
0x2300   :  { %v1743_v17 = vmul.f32 %v1741_v35, %v1737_v13  ;;  %v1994_v35 = vld [vmem:[%s3320_s4 + $0x48] sm:$0xff] }
0x2302   :  { %1745 = vrot.lane.b32.xlu1 %v1743_v17, %s2667_s22  ;;  %v2009_v17 = vld [vmem:[%s3320_s4 + $0xc0] sm:$0xff] }
0x2374   :  { %v1746_v59 = vpop.permute.xlu1 %1745 }
0x2375   :  { %v1748_v60 = vadd.f32 %v1746_v59, %v1738_v20  ;;  %v1993_v20 = vld [vmem:[%s3320_s4 + $0x40] sm:$0xff]  ;;  %v2008_v59 = vld [vmem:[%s3320_s4 + $0xb8] sm:$0xff] }
0x2377   :  { %2628 = vtanh.f32 %v1748_v60 }
0x2384   :  { %v2629_v44 = vpop.eup %2628 }
0x2385   :  { %1751 = vrot.lane.b32.xlu0 %v2629_v44, %s2666_s21  ;;  %v2007_v44 = vld [vmem:[%s3320_s4 + $0xb0] sm:$0xff] }
0x23f7   :  { %v1752_v61 = vpop.permute.xlu0 %1751 }
0x23f8   :  { %v1754_v62 = vmul.f32 %v1752_v61, %v1737_v13  ;;  %v2010_v13 = vld [vmem:[%s3320_s4 + $0xc8] sm:$0xff]  ;;  %v1991_v61 = vld [vmem:[%s3320_s4 + $0x30] sm:$0xff] }
0x23fa   :  { %1756 = vrot.lane.b32.xlu1 %v1754_v62, %s2667_s22  ;;  %v2536_v50 = vpack.i.bf16 %v3067_v31, %v1754_v62  ;;  %v2014_v31 = vld [vmem:[%s3320_s4 + $0xe8] sm:$0xff] }
0x23fb   :  { %v2006_v62 = vld [vmem:[%s3320_s4 + $0xa8] sm:$0xff] }
0x246c   :  { %v1757_v63 = vpop.permute.xlu1 %1756 }
0x246d   :  { %2517 = vmatmul.mubr.msk.f32.vlgmr.msra.gmra.mxu0 %vm177_vm5, %v1757_v63  ;;  %v1990_v63 = vld [vmem:[%s3320_s4 + $0x28] sm:$0xff] }
0x246e   :  { %2284 = vmatpush3.msra.mxu0 %v2000_v36 }
0x246f   :  { %2285 = vmatprep.subr.mxu0 %v2015_v51 }
0x2470   :  { %2286 = vmatpush3.msra.mxu0 %v1999_v52 }
0x2471   :  { %2287 = vmatprep.subr.mxu0 %v2014_v31 }
0x2472   :  { %2288 = vmatpush3.msra.mxu0 %v1998_v53 }
0x2473   :  { %2289 = vmatprep.subr.mxu0 %v2013_v54 }
0x2474   :  { %2290 = vmatpush3.msra.mxu0 %v1997_v9 }
0x2475   :  { %2291 = vmatprep.subr.mxu0 %v2012_v57 }
0x2476   :  { %2292 = vmatpush3.msra.mxu0 %v1996_v12 }
0x2477   :  { %2293 = vmatprep.subr.mxu0 %v2011_v58 }
0x2478   :  { %2294 = vmatpush3.msra.mxu0 %v1995_v5 }
0x2479   :  { %2295 = vmatprep.subr.mxu0 %v2010_v13 }
0x247a   :  { %2296 = vmatpush3.msra.mxu0 %v1994_v35 }
0x247b   :  { %2297 = vmatprep.subr.mxu0 %v2009_v17 }
0x247c   :  { %2298 = vmatpush3.msra.mxu0 %v1993_v20 }
0x247d   :  { %2299 = vmatprep.subr.mxu0 %v2008_v59 }
0x252d   :  { %v1826_v33 = vpop.f32.mrf.mxu0 }
0x252e   :  { %v1830_v1 = vadd.f32 %v1826_v33, %v1123_v0  ;;  %v2005_v0 = vld [vmem:[%s3320_s4 + $0xa0] sm:$0xff] }
0x252f   :  { %v2518_v2 = vpop.f32.mrf.mxu0 }
0x2530   :  { %v1831_v3 = vadd.f32 %v1830_v1, %v1830_v1 }
0x2532   :  { %v1832_v6 = vsel %vm2806_vm4, %v1831_v3, %v1830_v1  ;;  %v1989_v3 = vld [vmem:[%s3320_s4 + $0x20] sm:$0xff] }
0x2533   :  { %v2175_v14 = vmul.f32 -1.442695, %v1832_v6  ;;  %v2004_v6 = vld [vmem:[%s3320_s4 + $0x98] sm:$0xff] }
0x2535   :  { %2630 = vpow2.f32 %v2175_v14  ;;  %v1988_v14 = vld [vmem:[%s3320_s4 + $0x18] sm:$0xff] }
0x2542   :  { %v2631_v15 = vpop.eup %2630 }
0x2543   :  { %v1836_v16 = vadd.f32 1.0, %v2631_v15  ;;  %v2003_v15 = vld [vmem:[%s3320_s4 + $0x90] sm:$0xff] }
0x2545   :  { %2632 = vrcp.f32 %v1836_v16  ;;  %v1987_v16 = vld [vmem:[%s3320_s4 + $0x10] sm:$0xff] }
0x2552   :  { %v2633_v18 = vpop.eup %2632 }
0x2553   :  { %v1839_v19 = vadd.f32 %v2633_v18, %v2633_v18 }
0x2555   :  { %v2176_v27 = vadd.f32 -1.0, %v1839_v19  ;;  %v1986_v19 = vld [vmem:[%s3320_s4 + $0x8] sm:$0xff] }
0x2557   :  { %v1841_v23 = vsel %vm2806_vm4, %v2176_v27, %v2633_v18  ;;  %v2002_v18 = vld [vmem:[%s3320_s4 + $0x88] sm:$0xff]  ;;  %v2001_v27 = vld [vmem:[%s3320_s4 + $0x80] sm:$0xff] }
0x2558   :  { %1844 = vrot.lane.b32.xlu0 %v1841_v23, %s2666_s21  ;;  %v1842_v28 = vmul.f32 %v1841_v23, %v1748_v60  ;;  %v1992_v60 = vld [vmem:[%s3320_s4 + $0x38] sm:$0xff] }
0x2559   :  { %2300 = vmatpush3.msra.mxu0 %v1992_v60 }
0x255a   :  { %2301 = vmatprep.subr.mxu0 %v2007_v44 }
0x255b   :  { %2302 = vmatpush3.msra.mxu0 %v1991_v61 }
0x255c   :  { %2303 = vmatprep.subr.mxu0 %v2006_v62 }
0x255d   :  { %2304 = vmatpush3.msra.mxu0 %v1990_v63 }
0x255e   :  { %2305 = vmatprep.subr.mxu0 %v2005_v0 }
0x255f   :  { %2306 = vmatpush3.msra.mxu0 %v1989_v3 }
0x2560   :  { %2307 = vmatprep.subr.mxu0 %v2004_v6 }
0x2561   :  { %2308 = vmatpush3.msra.mxu0 %v1988_v14 }
0x2562   :  { %2309 = vmatprep.subr.mxu0 %v2003_v15 }
0x2563   :  { %2310 = vmatpush3.msra.mxu0 %v1987_v16 }
0x2564   :  { %2311 = vmatprep.subr.mxu0 %v2002_v18 }
0x2565   :  { %2312 = vmatpush3.msra.mxu0 %v1986_v19 }
0x2566   :  { %2313 = vmatprep.subr.mxu0 %v2001_v27 }
0x25ca   :  { %v1845_v22 = vpop.permute.xlu0 %1844 }
0x25cb   :  { %v1847_v26 = vmul.f32 %v1845_v22, %v1841_v23 }
0x25cd   :  { %1849 = vrot.lane.b32.xlu1 %v1847_v26, %s2667_s22 }
0x263f   :  { %v1850_v29 = vpop.permute.xlu1 %1849 }
0x2640   :  { %v3177_v32 = vadd.f32 %v1850_v29, %v1842_v28 }
0x2642   :  { %2634 = vtanh.f32 %v3177_v32 }
0x264f   :  { %v2635_v34 = vpop.eup %2634 }
0x2650   :  { %1855 = vrot.lane.b32.xlu0 %v2635_v34, %s2666_s21 }
0x26c2   :  { %v1856_v4 = vpop.permute.xlu0 %1855 }
0x26c3   :  { %v3181_v38 = vmul.f32 %v1856_v4, %v1841_v23  ;;  %v1985_v23 = vld [vmem:[%s3320_s4] sm:$0xff] }
0x26c4   :  { %2314 = vmatpush3.msra.mxu0 %v1985_v23 }
0x26c5   :  { %1860 = vrot.lane.b32.xlu1 %v3181_v38, %s2667_s22  ;;  %v2541_v26 = vpack.i.bf16 %v3098_v55, %v3181_v38 }
0x2737   :  { %v1861_v7 = vpop.permute.xlu1 %1860 }
0x2738   :  { %2528 = vmatmul.mubr.msk.f32.vlgmr.msra.gmra.mxu1 %vm177_vm5, %v1861_v7 }
0x27f8   :  { %v1930_v10 = vpop.f32.mrf.mxu1 }
0x27f9   :  { %v1934_v40 = vadd.f32 %v1930_v10, %v1128_v39 }
0x27fa   :  { %v2529_v41 = vpop.f32.mrf.mxu1 }
0x27fb   :  { %v1935_v30 = vadd.f32 %v1934_v40, %v1934_v40 }
0x27fd   :  { %v1936_v11 = vsel %vm2806_vm4, %v1935_v30, %v1934_v40 }
0x27fe   :  { %v2178_v42 = vmul.f32 -1.442695, %v1936_v11 }
0x2800   :  { %2636 = vpow2.f32 %v2178_v42 }
0x280d   :  { %v2637_v25 = vpop.eup %2636 }
0x280e   :  { %v1940_v43 = vadd.f32 1.0, %v2637_v25  ;;  %v2180_v25 = vld [vmem:[%s3320_s4 + $0x100] ss:$0 sm:$0xff] }
0x2810   :  { %2638 = vrcp.f32 %v1940_v43 }
0x281d   :  { %v2639_v45 = vpop.eup %2638 }
0x281e   :  { %v1943_v46 = vadd.f32 %v2639_v45, %v2639_v45 }
0x2820   :  { %v2179_v47 = vadd.f32 -1.0, %v1943_v46 }
0x2822   :  { %v3192_v49 = vsel %vm2806_vm4, %v2179_v47, %v2639_v45 }
0x2823   :  { %1948 = vrot.lane.b32.xlu0 %v3192_v49, %s2666_s21  ;;  %v1946_v33 = vmul.f32 %v3192_v49, %v3177_v32 }
0x2895   :  { %v1949_v24 = vpop.permute.xlu0 %1948 }
0x2896   :  { %v1951_v37 = vmul.f32 %v1949_v24, %v3192_v49 }
0x2898   :  { %1953 = vrot.lane.b32.xlu1 %v1951_v37, %s2667_s22 }
0x289c   :  { %2537 = vrot.lane.b32.xlu1 %v2536_v50, %s2666_s21 }
0x290a   :  { %v1954_v1 = vpop.permute.xlu1 %1953 }
0x290b   :  { %v1956_v2 = vadd.f32 %v1954_v1, %v1946_v33 }
0x290d   :  { %2640 = vtanh.f32 %v1956_v2 }
0x290e   :  { %v2538_v28 = vpop.permute.xlu1 %2537 }
0x290f   :  { %v2540_v32 = vunpack.i.h.bf16 %v2538_v28  ;;  %v2539_v34 = vunpack.i.l.bf16 %v2538_v28 }
0x2911   :  { %v1977_v10 = vsel %vm177_vm5, %v3038_v56, %v2540_v32  ;;  %v1982_v40 = vsel %vm177_vm5, %v3145_v48, %v2539_v34 }
0x291a   :  { %v2641_v22 = vpop.eup %2640 }
0x291b   :  { %1959 = vrot.lane.b32.xlu0 %v2641_v22, %s2666_s21 }
0x291f   :  { %2542 = vrot.lane.b32.xlu0 %v2541_v26, %s2668_s20 }
0x298d   :  { %v1960_v29 = vpop.permute.xlu0 %1959 }
0x298e   :  { %v1962_v41 = vmul.f32 %v1960_v29, %v3192_v49 }
0x2991   :  { %v2543_v4 = vpop.permute.xlu0 %2542 }
0x2992   :  { %v2545_v7 = vunpack.i.h.bf16 %v2543_v4  ;;  %v2544_v39 = vunpack.i.l.bf16 %v2543_v4 }
0x2994   :  { %v1979_v55 = vsel %vm1978_vm6, %v1977_v10, %v2545_v7  ;;  %v1983_v38 = vsel %vm1978_vm6, %v1982_v40, %v2544_v39 }
0x2995   :  { %v1984_v30 = vsel %vm1980_vm7, %v1983_v38, %v1962_v41  ;;  %v1981_v11 = vsel %vm1980_vm7, %v1979_v55, %v3121_v21 }
0x2996   :  { %2086 = vmatprep.mubr.f32.mxu0 %v1984_v30 }
0x2997   :  { %2087 = vmatmul.mubr.f32.vlgmr.msra.gmra.mxu0 %v1981_v11 }
0x2a57   :  { %v2315_v42 = vpop.f32.mrf.mxu0 }
0x2a59   :  { %v2316_v56 = vpop.f32.mrf.mxu0 }
0x2a5a   :  { %v2317_v48 = vadd.f32 %v2316_v56, %v2315_v42 }
0x2a5c   :  { %v2089_v43 = vadd.f32 %v2317_v48, %v2180_v25 }
0x2a5e   :  { %2092 = vst.msk [vmem:[#allocation2] sm:$0xff] %vm1978_vm6, %v2089_v43 }
0x2a5f   :  { %2653 = shalt.err (!%p2650_p4)
}
0x2a60   :  { %2102 = dma.vmem_to_hbm [thread:$0]  %s2100_s24, 128, %s3321_s5, [#allocation3]  }
0x2a61   :  { %2662 = dma.done.wait [#allocation3], 128  }
0x2a62   :  { %2663 = vsyncadd [#allocation3], 4294967168 }
0x2a63   :  { %2106 = vsyncpa [#allocation3], 1 }

</bundles_post_ra>
